<compile_context>
chip_gen: v7x
topology: tpu7x:2x2x1
jax: 0.10.0
libtpu: 0.0.40
codegen_flags: <defaults>
</compile_context>

<pallas_src>
import jax
import jax.numpy as jnp
from jax.experimental import pallas as pl
from jax.experimental.pallas import tpu as pltpu

BN_EPS = 1e-5


# --------------------------------------------------------------------------
# Pallas kernels
# --------------------------------------------------------------------------
def _conv_bn_relu_pool_kernel(pt_ref, w_ref, b_ref, g_ref, beta_ref, o_ref):
    """Fused conv (as matmul) + BatchNorm(train) + ReLU + 2x2 max-pool.

    pt_ref:   (4, K, Q) bf16  -- im2col patches, transposed, pre-split into the
                                 four 2x2-pool window positions; Q = B*Ho*Wo lanes.
    w_ref:    (Cout, K) bf16  -- conv weight in PyTorch flatten order (cin, kh, kw).
    b_ref, g_ref, beta_ref: (Cout, 1) f32 -- conv bias, BN gamma, BN beta.
    o_ref:    (Cout, Q) bf16  -- pooled activations, lanes ordered (b, ho, wo).
    """
    w = w_ref[...]
    b = b_ref[...]

    # Convolution for each of the four pooling-window positions (MXU, f32 accum).
    z = [jnp.dot(w, pt_ref[i], preferred_element_type=jnp.float32) + b
         for i in range(4)]

    # BatchNorm2d train-mode stats over all (b, h, w) positions per channel
    # (biased variance, eps=1e-5) -- computed in f32.
    cnt = 4.0 * z[0].shape[1]
    mean = sum(zi.sum(axis=1, keepdims=True) for zi in z) / cnt
    d = [zi - mean for zi in z]
    var = sum(jnp.square(di).sum(axis=1, keepdims=True) for di in d) / cnt
    scale = jax.lax.rsqrt(var + BN_EPS) * g_ref[...]
    shift = beta_ref[...]

    # Affine + ReLU, then MaxPool2d(2,2) = elementwise max of the four quarters.
    y = [jnp.maximum(di * scale + shift, 0.0) for di in d]
    o_ref[...] = jnp.maximum(jnp.maximum(y[0], y[1]),
                             jnp.maximum(y[2], y[3])).astype(o_ref.dtype)


def _linear_kernel(x_ref, w_ref, b_ref, o_ref):
    o_ref[...] = (
        jnp.dot(x_ref[...], w_ref[...], preferred_element_type=jnp.float32)
        + b_ref[...]
    )


def _vmem_specs(n):
    return [pl.BlockSpec(memory_space=pltpu.MemorySpace.VMEM) for _ in range(n)]


def conv_bn_relu_pool(pt, w, bias, gamma, beta):
    cout = w.shape[0]
    q = pt.shape[2]
    return pl.pallas_call(
        _conv_bn_relu_pool_kernel,
        out_shape=jax.ShapeDtypeStruct((cout, q), jnp.bfloat16),
        in_specs=_vmem_specs(5),
        out_specs=pl.BlockSpec(memory_space=pltpu.MemorySpace.VMEM),
    )(pt, w,
      bias.reshape(cout, 1).astype(jnp.float32),
      gamma.reshape(cout, 1).astype(jnp.float32),
      beta.reshape(cout, 1).astype(jnp.float32))


def linear(x, w_kn, bias):
    bsz = x.shape[0]
    n = w_kn.shape[1]
    return pl.pallas_call(
        _linear_kernel,
        out_shape=jax.ShapeDtypeStruct((bsz, n), jnp.float32),
        in_specs=_vmem_specs(3),
        out_specs=pl.BlockSpec(memory_space=pltpu.MemorySpace.VMEM),
    )(x, w_kn, bias.reshape(1, n).astype(jnp.float32))


# --------------------------------------------------------------------------
# Host-side glue (pure pad / slice / transpose; all tiny and fused by XLA).
# --------------------------------------------------------------------------
def _im2col_quarters(x_cbhw, k=5, pad=2):
    """Channel-first (C,B,H,W) -> (4, C*k*k, B*(H//2)*(W//2)) patch tensor.

    Axis 0 is the position inside each 2x2 pooling window (q = 2*hp + wp);
    rows are ordered (cin, kh, kw) to match PyTorch's weight.reshape(Cout, -1);
    columns inside a quarter are ordered (b, ho, wo).
    """
    C, B, H, W = x_cbhw.shape
    Ho, Wo = H // 2, W // 2
    xp = jnp.pad(x_cbhw, ((0, 0), (0, 0), (pad, pad), (pad, pad)))
    cols = [xp[:, :, i:i + H, j:j + W] for i in range(k) for j in range(k)]
    p = jnp.stack(cols, axis=1)                  # (C, k*k, B, H, W)
    p = p.reshape(C * k * k, B, Ho, 2, Wo, 2)    # (K, B, Ho, hp, Wo, wp)
    p = p.transpose(3, 5, 0, 1, 2, 4)            # (hp, wp, K, B, Ho, Wo)
    return p.reshape(4, C * k * k, B * Ho * Wo)


def convnet_forward(x, params):
    B = x.shape[0]                                            # (B, 1, 28, 28) NCHW
    x0 = x.astype(jnp.bfloat16).transpose(1, 0, 2, 3)         # (1, B, 28, 28)

    # ----- layer1: Conv(1->16,k5,p2) + BN + ReLU + MaxPool(2,2) -----
    pt1 = _im2col_quarters(x0)                                # (4, 25, B*14*14)
    w1 = params["conv1_w"].reshape(16, -1).astype(jnp.bfloat16)
    y1 = conv_bn_relu_pool(pt1, w1, params["conv1_b"],
                           params["bn1_g"], params["bn1_b"])  # (16, B*196) bf16

    # ----- layer2: Conv(16->32,k5,p2) + BN + ReLU + MaxPool(2,2) -----
    x1 = y1.reshape(16, B, 14, 14)                            # channel-first view
    pt2 = _im2col_quarters(x1)                                # (4, 400, B*7*7)
    w2 = params["conv2_w"].reshape(32, -1).astype(jnp.bfloat16)
    y2 = conv_bn_relu_pool(pt2, w2, params["conv2_b"],
                           params["bn2_g"], params["bn2_b"])  # (32, B*49) bf16

    # ----- fc -----  (~13 KB reorder to PyTorch's per-image (c,h,w) flatten)
    flat = y2.reshape(32, B, 49).transpose(1, 0, 2).reshape(B, 32 * 49)
    wfc = params["fc_w"].T.astype(jnp.bfloat16)               # (1568, 10)
    return linear(flat, wfc, params["fc_b"])                  # (B, 10) f32


def init_params(key):
    """Deterministic synthetic parameters with PyTorch __init__ shapes."""
    ks = jax.random.split(key, 6)
    return dict(
        conv1_w=0.10 * jax.random.normal(ks[0], (16, 1, 5, 5), jnp.float32),
        conv1_b=0.10 * jax.random.normal(ks[1], (16,), jnp.float32),
        bn1_g=jnp.ones((16,), jnp.float32),
        bn1_b=jnp.zeros((16,), jnp.float32),
        conv2_w=0.05 * jax.random.normal(ks[2], (32, 16, 5, 5), jnp.float32),
        conv2_b=0.10 * jax.random.normal(ks[3], (32,), jnp.float32),
        bn2_g=jnp.ones((32,), jnp.float32),
        bn2_b=jnp.zeros((32,), jnp.float32),
        fc_w=0.02 * jax.random.normal(ks[4], (10, 32 * 7 * 7), jnp.float32),
        fc_b=0.02 * jax.random.normal(ks[5], (10,), jnp.float32),
    )


if __name__ == "__main__":
    root = jax.random.PRNGKey(0)
    k_x, k_p = jax.random.split(root)
    B = 2
    x = jax.random.normal(k_x, (B, 1, 28, 28), dtype=jnp.float32)  # MNIST-shaped NCHW
    params = init_params(k_p)

    out = jax.jit(convnet_forward)(x, params)
    out = jax.block_until_ready(out)

    assert out.shape == (B, 10) and out.dtype == jnp.float32
    assert bool(jnp.all(jnp.isfinite(out)))
    print("KERNEL_OK")
</pallas_src>

<mosaic_0001>
module attributes {stable_mosaic.version = 11 : i64} {
  func.func @_conv_bn_relu_pool_kernel(%arg0: memref<4x25x392xbf16, #tpu.memory_space<vmem>>, %arg1: memref<16x25xbf16, #tpu.memory_space<vmem>>, %arg2: memref<16x1xf32, #tpu.memory_space<vmem>>, %arg3: memref<16x1xf32, #tpu.memory_space<vmem>>, %arg4: memref<16x1xf32, #tpu.memory_space<vmem>>, %arg5: memref<16x392xbf16, #tpu.memory_space<vmem>>) attributes {dimension_semantics = [], scalar_prefetch = 0 : i64, scratch_operands = 0 : i64, tpu.core_type = #tpu.core_type<tc>} {
    %c0 = arith.constant 0 : index
    %c0_0 = arith.constant 0 : index
    %0 = vector.load %arg1[%c0, %c0_0] : memref<16x25xbf16, #tpu.memory_space<vmem>>, vector<16x25xbf16>
    %c0_1 = arith.constant 0 : index
    %c0_2 = arith.constant 0 : index
    %1 = vector.load %arg2[%c0_1, %c0_2] : memref<16x1xf32, #tpu.memory_space<vmem>>, vector<16x1xf32>
    %c0_3 = arith.constant 0 : index
    %c0_4 = arith.constant 0 : index
    %c0_5 = arith.constant 0 : index
    %2 = vector.load %arg0[%c0_3, %c0_4, %c0_5] : memref<4x25x392xbf16, #tpu.memory_space<vmem>>, vector<1x25x392xbf16>
    %3 = vector.shape_cast %2 : vector<1x25x392xbf16> to vector<25x392xbf16>
    %cst = arith.constant dense<0.000000e+00> : vector<16x392xf32>
    %4 = tpu.matmul %0, %3, %cst {dimension_numbers = #tpu.dot_dimension_numbers<[1], [0], [0], [1], [0, 0, 1, 1], [], []>} : vector<16x25xbf16>, vector<25x392xbf16>, vector<16x392xf32> -> vector<16x392xf32>
    %5 = vector.broadcast %1 : vector<16x1xf32> to vector<16x392xf32>
    %6 = arith.addf %4, %5 : vector<16x392xf32>
    %c1 = arith.constant 1 : index
    %c0_6 = arith.constant 0 : index
    %c0_7 = arith.constant 0 : index
    %7 = vector.load %arg0[%c1, %c0_6, %c0_7] : memref<4x25x392xbf16, #tpu.memory_space<vmem>>, vector<1x25x392xbf16>
    %8 = vector.shape_cast %7 : vector<1x25x392xbf16> to vector<25x392xbf16>
    %cst_8 = arith.constant dense<0.000000e+00> : vector<16x392xf32>
    %9 = tpu.matmul %0, %8, %cst_8 {dimension_numbers = #tpu.dot_dimension_numbers<[1], [0], [0], [1], [0, 0, 1, 1], [], []>} : vector<16x25xbf16>, vector<25x392xbf16>, vector<16x392xf32> -> vector<16x392xf32>
    %10 = vector.broadcast %1 : vector<16x1xf32> to vector<16x392xf32>
    %11 = arith.addf %9, %10 : vector<16x392xf32>
    %c2 = arith.constant 2 : index
    %c0_9 = arith.constant 0 : index
    %c0_10 = arith.constant 0 : index
    %12 = vector.load %arg0[%c2, %c0_9, %c0_10] : memref<4x25x392xbf16, #tpu.memory_space<vmem>>, vector<1x25x392xbf16>
    %13 = vector.shape_cast %12 : vector<1x25x392xbf16> to vector<25x392xbf16>
    %cst_11 = arith.constant dense<0.000000e+00> : vector<16x392xf32>
    %14 = tpu.matmul %0, %13, %cst_11 {dimension_numbers = #tpu.dot_dimension_numbers<[1], [0], [0], [1], [0, 0, 1, 1], [], []>} : vector<16x25xbf16>, vector<25x392xbf16>, vector<16x392xf32> -> vector<16x392xf32>
    %15 = vector.broadcast %1 : vector<16x1xf32> to vector<16x392xf32>
    %16 = arith.addf %14, %15 : vector<16x392xf32>
    %c3 = arith.constant 3 : index
    %c0_12 = arith.constant 0 : index
    %c0_13 = arith.constant 0 : index
    %17 = vector.load %arg0[%c3, %c0_12, %c0_13] : memref<4x25x392xbf16, #tpu.memory_space<vmem>>, vector<1x25x392xbf16>
    %18 = vector.shape_cast %17 : vector<1x25x392xbf16> to vector<25x392xbf16>
    %cst_14 = arith.constant dense<0.000000e+00> : vector<16x392xf32>
    %19 = tpu.matmul %0, %18, %cst_14 {dimension_numbers = #tpu.dot_dimension_numbers<[1], [0], [0], [1], [0, 0, 1, 1], [], []>} : vector<16x25xbf16>, vector<25x392xbf16>, vector<16x392xf32> -> vector<16x392xf32>
    %20 = vector.broadcast %1 : vector<16x1xf32> to vector<16x392xf32>
    %21 = arith.addf %19, %20 : vector<16x392xf32>
    %cst_15 = arith.constant dense<0.000000e+00> : vector<16xf32>
    %22 = vector.multi_reduction <add>, %6, %cst_15 [1] : vector<16x392xf32> to vector<16xf32>
    %23 = vector.shape_cast %22 : vector<16xf32> to vector<16x1xf32>
    %cst_16 = arith.constant 0.000000e+00 : f32
    %24 = vector.broadcast %cst_16 : f32 to vector<16x1xf32>
    %25 = arith.addf %24, %23 : vector<16x1xf32>
    %cst_17 = arith.constant dense<0.000000e+00> : vector<16xf32>
    %26 = vector.multi_reduction <add>, %11, %cst_17 [1] : vector<16x392xf32> to vector<16xf32>
    %27 = vector.shape_cast %26 : vector<16xf32> to vector<16x1xf32>
    %28 = arith.addf %25, %27 : vector<16x1xf32>
    %cst_18 = arith.constant dense<0.000000e+00> : vector<16xf32>
    %29 = vector.multi_reduction <add>, %16, %cst_18 [1] : vector<16x392xf32> to vector<16xf32>
    %30 = vector.shape_cast %29 : vector<16xf32> to vector<16x1xf32>
    %31 = arith.addf %28, %30 : vector<16x1xf32>
    %cst_19 = arith.constant dense<0.000000e+00> : vector<16xf32>
    %32 = vector.multi_reduction <add>, %21, %cst_19 [1] : vector<16x392xf32> to vector<16xf32>
    %33 = vector.shape_cast %32 : vector<16xf32> to vector<16x1xf32>
    %34 = arith.addf %31, %33 : vector<16x1xf32>
    %cst_20 = arith.constant 1.568000e+03 : f32
    %35 = vector.broadcast %cst_20 : f32 to vector<16x1xf32>
    %36 = arith.divf %34, %35 : vector<16x1xf32>
    %37 = vector.broadcast %36 : vector<16x1xf32> to vector<16x392xf32>
    %38 = arith.subf %6, %37 : vector<16x392xf32>
    %39 = vector.broadcast %36 : vector<16x1xf32> to vector<16x392xf32>
    %40 = arith.subf %11, %39 : vector<16x392xf32>
    %41 = vector.broadcast %36 : vector<16x1xf32> to vector<16x392xf32>
    %42 = arith.subf %16, %41 : vector<16x392xf32>
    %43 = vector.broadcast %36 : vector<16x1xf32> to vector<16x392xf32>
    %44 = arith.subf %21, %43 : vector<16x392xf32>
    %45 = arith.mulf %38, %38 : vector<16x392xf32>
    %cst_21 = arith.constant dense<0.000000e+00> : vector<16xf32>
    %46 = vector.multi_reduction <add>, %45, %cst_21 [1] : vector<16x392xf32> to vector<16xf32>
    %47 = vector.shape_cast %46 : vector<16xf32> to vector<16x1xf32>
    %cst_22 = arith.constant 0.000000e+00 : f32
    %48 = vector.broadcast %cst_22 : f32 to vector<16x1xf32>
    %49 = arith.addf %48, %47 : vector<16x1xf32>
    %50 = arith.mulf %40, %40 : vector<16x392xf32>
    %cst_23 = arith.constant dense<0.000000e+00> : vector<16xf32>
    %51 = vector.multi_reduction <add>, %50, %cst_23 [1] : vector<16x392xf32> to vector<16xf32>
    %52 = vector.shape_cast %51 : vector<16xf32> to vector<16x1xf32>
    %53 = arith.addf %49, %52 : vector<16x1xf32>
    %54 = arith.mulf %42, %42 : vector<16x392xf32>
    %cst_24 = arith.constant dense<0.000000e+00> : vector<16xf32>
    %55 = vector.multi_reduction <add>, %54, %cst_24 [1] : vector<16x392xf32> to vector<16xf32>
    %56 = vector.shape_cast %55 : vector<16xf32> to vector<16x1xf32>
    %57 = arith.addf %53, %56 : vector<16x1xf32>
    %58 = arith.mulf %44, %44 : vector<16x392xf32>
    %cst_25 = arith.constant dense<0.000000e+00> : vector<16xf32>
    %59 = vector.multi_reduction <add>, %58, %cst_25 [1] : vector<16x392xf32> to vector<16xf32>
    %60 = vector.shape_cast %59 : vector<16xf32> to vector<16x1xf32>
    %61 = arith.addf %57, %60 : vector<16x1xf32>
    %cst_26 = arith.constant 1.568000e+03 : f32
    %62 = vector.broadcast %cst_26 : f32 to vector<16x1xf32>
    %63 = arith.divf %61, %62 : vector<16x1xf32>
    %cst_27 = arith.constant 9.99999974E-6 : f32
    %64 = vector.broadcast %cst_27 : f32 to vector<16x1xf32>
    %65 = arith.addf %63, %64 : vector<16x1xf32>
    %66 = math.rsqrt %65 : vector<16x1xf32>
    %c0_28 = arith.constant 0 : index
    %c0_29 = arith.constant 0 : index
    %67 = vector.load %arg3[%c0_28, %c0_29] : memref<16x1xf32, #tpu.memory_space<vmem>>, vector<16x1xf32>
    %68 = arith.mulf %66, %67 : vector<16x1xf32>
    %c0_30 = arith.constant 0 : index
    %c0_31 = arith.constant 0 : index
    %69 = vector.load %arg4[%c0_30, %c0_31] : memref<16x1xf32, #tpu.memory_space<vmem>>, vector<16x1xf32>
    %70 = vector.broadcast %68 : vector<16x1xf32> to vector<16x392xf32>
    %71 = arith.mulf %38, %70 : vector<16x392xf32>
    %72 = vector.broadcast %69 : vector<16x1xf32> to vector<16x392xf32>
    %73 = arith.addf %71, %72 : vector<16x392xf32>
    %cst_32 = arith.constant 0.000000e+00 : f32
    %74 = vector.broadcast %cst_32 : f32 to vector<16x392xf32>
    %75 = arith.maximumf %73, %74 : vector<16x392xf32>
    %76 = vector.broadcast %68 : vector<16x1xf32> to vector<16x392xf32>
    %77 = arith.mulf %40, %76 : vector<16x392xf32>
    %78 = vector.broadcast %69 : vector<16x1xf32> to vector<16x392xf32>
    %79 = arith.addf %77, %78 : vector<16x392xf32>
    %cst_33 = arith.constant 0.000000e+00 : f32
    %80 = vector.broadcast %cst_33 : f32 to vector<16x392xf32>
    %81 = arith.maximumf %79, %80 : vector<16x392xf32>
    %82 = vector.broadcast %68 : vector<16x1xf32> to vector<16x392xf32>
    %83 = arith.mulf %42, %82 : vector<16x392xf32>
    %84 = vector.broadcast %69 : vector<16x1xf32> to vector<16x392xf32>
    %85 = arith.addf %83, %84 : vector<16x392xf32>
    %cst_34 = arith.constant 0.000000e+00 : f32
    %86 = vector.broadcast %cst_34 : f32 to vector<16x392xf32>
    %87 = arith.maximumf %85, %86 : vector<16x392xf32>
    %88 = vector.broadcast %68 : vector<16x1xf32> to vector<16x392xf32>
    %89 = arith.mulf %44, %88 : vector<16x392xf32>
    %90 = vector.broadcast %69 : vector<16x1xf32> to vector<16x392xf32>
    %91 = arith.addf %89, %90 : vector<16x392xf32>
    %cst_35 = arith.constant 0.000000e+00 : f32
    %92 = vector.broadcast %cst_35 : f32 to vector<16x392xf32>
    %93 = arith.maximumf %91, %92 : vector<16x392xf32>
    %94 = arith.maximumf %75, %81 : vector<16x392xf32>
    %95 = arith.maximumf %87, %93 : vector<16x392xf32>
    %96 = arith.maximumf %94, %95 : vector<16x392xf32>
    %97 = arith.truncf %96 : vector<16x392xf32> to vector<16x392xbf16>
    %c0_36 = arith.constant 0 : index
    %c0_37 = arith.constant 0 : index
    %98 = vector.load %arg5[%c0_36, %c0_37] : memref<16x392xbf16, #tpu.memory_space<vmem>>, vector<16x392xbf16>
    tpu.vector_store %arg5[%c0_36, %c0_37], %97 {strides = array<i32>} : memref<16x392xbf16, #tpu.memory_space<vmem>>, vector<16x392xbf16>,
    return
  }
}

module attributes {stable_mosaic.version = 11 : i64} {
  func.func @_conv_bn_relu_pool_kernel(%arg0: memref<4x400x98xbf16, #tpu.memory_space<vmem>>, %arg1: memref<32x400xbf16, #tpu.memory_space<vmem>>, %arg2: memref<32x1xf32, #tpu.memory_space<vmem>>, %arg3: memref<32x1xf32, #tpu.memory_space<vmem>>, %arg4: memref<32x1xf32, #tpu.memory_space<vmem>>, %arg5: memref<32x98xbf16, #tpu.memory_space<vmem>>) attributes {dimension_semantics = [], scalar_prefetch = 0 : i64, scratch_operands = 0 : i64, tpu.core_type = #tpu.core_type<tc>} {
    %c0 = arith.constant 0 : index
    %c0_0 = arith.constant 0 : index
    %0 = vector.load %arg1[%c0, %c0_0] : memref<32x400xbf16, #tpu.memory_space<vmem>>, vector<32x400xbf16>
    %c0_1 = arith.constant 0 : index
    %c0_2 = arith.constant 0 : index
    %1 = vector.load %arg2[%c0_1, %c0_2] : memref<32x1xf32, #tpu.memory_space<vmem>>, vector<32x1xf32>
    %c0_3 = arith.constant 0 : index
    %c0_4 = arith.constant 0 : index
    %c0_5 = arith.constant 0 : index
    %2 = vector.load %arg0[%c0_3, %c0_4, %c0_5] : memref<4x400x98xbf16, #tpu.memory_space<vmem>>, vector<1x400x98xbf16>
    %3 = vector.shape_cast %2 : vector<1x400x98xbf16> to vector<400x98xbf16>
    %cst = arith.constant dense<0.000000e+00> : vector<32x98xf32>
    %4 = tpu.matmul %0, %3, %cst {dimension_numbers = #tpu.dot_dimension_numbers<[1], [0], [0], [1], [0, 0, 1, 1], [], []>} : vector<32x400xbf16>, vector<400x98xbf16>, vector<32x98xf32> -> vector<32x98xf32>
    %5 = vector.broadcast %1 : vector<32x1xf32> to vector<32x98xf32>
    %6 = arith.addf %4, %5 : vector<32x98xf32>
    %c1 = arith.constant 1 : index
    %c0_6 = arith.constant 0 : index
    %c0_7 = arith.constant 0 : index
    %7 = vector.load %arg0[%c1, %c0_6, %c0_7] : memref<4x400x98xbf16, #tpu.memory_space<vmem>>, vector<1x400x98xbf16>
    %8 = vector.shape_cast %7 : vector<1x400x98xbf16> to vector<400x98xbf16>
    %cst_8 = arith.constant dense<0.000000e+00> : vector<32x98xf32>
    %9 = tpu.matmul %0, %8, %cst_8 {dimension_numbers = #tpu.dot_dimension_numbers<[1], [0], [0], [1], [0, 0, 1, 1], [], []>} : vector<32x400xbf16>, vector<400x98xbf16>, vector<32x98xf32> -> vector<32x98xf32>
    %10 = vector.broadcast %1 : vector<32x1xf32> to vector<32x98xf32>
    %11 = arith.addf %9, %10 : vector<32x98xf32>
    %c2 = arith.constant 2 : index
    %c0_9 = arith.constant 0 : index
    %c0_10 = arith.constant 0 : index
    %12 = vector.load %arg0[%c2, %c0_9, %c0_10] : memref<4x400x98xbf16, #tpu.memory_space<vmem>>, vector<1x400x98xbf16>
    %13 = vector.shape_cast %12 : vector<1x400x98xbf16> to vector<400x98xbf16>
    %cst_11 = arith.constant dense<0.000000e+00> : vector<32x98xf32>
    %14 = tpu.matmul %0, %13, %cst_11 {dimension_numbers = #tpu.dot_dimension_numbers<[1], [0], [0], [1], [0, 0, 1, 1], [], []>} : vector<32x400xbf16>, vector<400x98xbf16>, vector<32x98xf32> -> vector<32x98xf32>
    %15 = vector.broadcast %1 : vector<32x1xf32> to vector<32x98xf32>
    %16 = arith.addf %14, %15 : vector<32x98xf32>
    %c3 = arith.constant 3 : index
    %c0_12 = arith.constant 0 : index
    %c0_13 = arith.constant 0 : index
    %17 = vector.load %arg0[%c3, %c0_12, %c0_13] : memref<4x400x98xbf16, #tpu.memory_space<vmem>>, vector<1x400x98xbf16>
    %18 = vector.shape_cast %17 : vector<1x400x98xbf16> to vector<400x98xbf16>
    %cst_14 = arith.constant dense<0.000000e+00> : vector<32x98xf32>
    %19 = tpu.matmul %0, %18, %cst_14 {dimension_numbers = #tpu.dot_dimension_numbers<[1], [0], [0], [1], [0, 0, 1, 1], [], []>} : vector<32x400xbf16>, vector<400x98xbf16>, vector<32x98xf32> -> vector<32x98xf32>
    %20 = vector.broadcast %1 : vector<32x1xf32> to vector<32x98xf32>
    %21 = arith.addf %19, %20 : vector<32x98xf32>
    %cst_15 = arith.constant dense<0.000000e+00> : vector<32xf32>
    %22 = vector.multi_reduction <add>, %6, %cst_15 [1] : vector<32x98xf32> to vector<32xf32>
    %23 = vector.shape_cast %22 : vector<32xf32> to vector<32x1xf32>
    %cst_16 = arith.constant 0.000000e+00 : f32
    %24 = vector.broadcast %cst_16 : f32 to vector<32x1xf32>
    %25 = arith.addf %24, %23 : vector<32x1xf32>
    %cst_17 = arith.constant dense<0.000000e+00> : vector<32xf32>
    %26 = vector.multi_reduction <add>, %11, %cst_17 [1] : vector<32x98xf32> to vector<32xf32>
    %27 = vector.shape_cast %26 : vector<32xf32> to vector<32x1xf32>
    %28 = arith.addf %25, %27 : vector<32x1xf32>
    %cst_18 = arith.constant dense<0.000000e+00> : vector<32xf32>
    %29 = vector.multi_reduction <add>, %16, %cst_18 [1] : vector<32x98xf32> to vector<32xf32>
    %30 = vector.shape_cast %29 : vector<32xf32> to vector<32x1xf32>
    %31 = arith.addf %28, %30 : vector<32x1xf32>
    %cst_19 = arith.constant dense<0.000000e+00> : vector<32xf32>
    %32 = vector.multi_reduction <add>, %21, %cst_19 [1] : vector<32x98xf32> to vector<32xf32>
    %33 = vector.shape_cast %32 : vector<32xf32> to vector<32x1xf32>
    %34 = arith.addf %31, %33 : vector<32x1xf32>
    %cst_20 = arith.constant 3.920000e+02 : f32
    %35 = vector.broadcast %cst_20 : f32 to vector<32x1xf32>
    %36 = arith.divf %34, %35 : vector<32x1xf32>
    %37 = vector.broadcast %36 : vector<32x1xf32> to vector<32x98xf32>
    %38 = arith.subf %6, %37 : vector<32x98xf32>
    %39 = vector.broadcast %36 : vector<32x1xf32> to vector<32x98xf32>
    %40 = arith.subf %11, %39 : vector<32x98xf32>
    %41 = vector.broadcast %36 : vector<32x1xf32> to vector<32x98xf32>
    %42 = arith.subf %16, %41 : vector<32x98xf32>
    %43 = vector.broadcast %36 : vector<32x1xf32> to vector<32x98xf32>
    %44 = arith.subf %21, %43 : vector<32x98xf32>
    %45 = arith.mulf %38, %38 : vector<32x98xf32>
    %cst_21 = arith.constant dense<0.000000e+00> : vector<32xf32>
    %46 = vector.multi_reduction <add>, %45, %cst_21 [1] : vector<32x98xf32> to vector<32xf32>
    %47 = vector.shape_cast %46 : vector<32xf32> to vector<32x1xf32>
    %cst_22 = arith.constant 0.000000e+00 : f32
    %48 = vector.broadcast %cst_22 : f32 to vector<32x1xf32>
    %49 = arith.addf %48, %47 : vector<32x1xf32>
    %50 = arith.mulf %40, %40 : vector<32x98xf32>
    %cst_23 = arith.constant dense<0.000000e+00> : vector<32xf32>
    %51 = vector.multi_reduction <add>, %50, %cst_23 [1] : vector<32x98xf32> to vector<32xf32>
    %52 = vector.shape_cast %51 : vector<32xf32> to vector<32x1xf32>
    %53 = arith.addf %49, %52 : vector<32x1xf32>
    %54 = arith.mulf %42, %42 : vector<32x98xf32>
    %cst_24 = arith.constant dense<0.000000e+00> : vector<32xf32>
    %55 = vector.multi_reduction <add>, %54, %cst_24 [1] : vector<32x98xf32> to vector<32xf32>
    %56 = vector.shape_cast %55 : vector<32xf32> to vector<32x1xf32>
    %57 = arith.addf %53, %56 : vector<32x1xf32>
    %58 = arith.mulf %44, %44 : vector<32x98xf32>
    %cst_25 = arith.constant dense<0.000000e+00> : vector<32xf32>
    %59 = vector.multi_reduction <add>, %58, %cst_25 [1] : vector<32x98xf32> to vector<32xf32>
    %60 = vector.shape_cast %59 : vector<32xf32> to vector<32x1xf32>
    %61 = arith.addf %57, %60 : vector<32x1xf32>
    %cst_26 = arith.constant 3.920000e+02 : f32
    %62 = vector.broadcast %cst_26 : f32 to vector<32x1xf32>
    %63 = arith.divf %61, %62 : vector<32x1xf32>
    %cst_27 = arith.constant 9.99999974E-6 : f32
    %64 = vector.broadcast %cst_27 : f32 to vector<32x1xf32>
    %65 = arith.addf %63, %64 : vector<32x1xf32>
    %66 = math.rsqrt %65 : vector<32x1xf32>
    %c0_28 = arith.constant 0 : index
    %c0_29 = arith.constant 0 : index
    %67 = vector.load %arg3[%c0_28, %c0_29] : memref<32x1xf32, #tpu.memory_space<vmem>>, vector<32x1xf32>
    %68 = arith.mulf %66, %67 : vector<32x1xf32>
    %c0_30 = arith.constant 0 : index
    %c0_31 = arith.constant 0 : index
    %69 = vector.load %arg4[%c0_30, %c0_31] : memref<32x1xf32, #tpu.memory_space<vmem>>, vector<32x1xf32>
    %70 = vector.broadcast %68 : vector<32x1xf32> to vector<32x98xf32>
    %71 = arith.mulf %38, %70 : vector<32x98xf32>
    %72 = vector.broadcast %69 : vector<32x1xf32> to vector<32x98xf32>
    %73 = arith.addf %71, %72 : vector<32x98xf32>
    %cst_32 = arith.constant 0.000000e+00 : f32
    %74 = vector.broadcast %cst_32 : f32 to vector<32x98xf32>
    %75 = arith.maximumf %73, %74 : vector<32x98xf32>
    %76 = vector.broadcast %68 : vector<32x1xf32> to vector<32x98xf32>
    %77 = arith.mulf %40, %76 : vector<32x98xf32>
    %78 = vector.broadcast %69 : vector<32x1xf32> to vector<32x98xf32>
    %79 = arith.addf %77, %78 : vector<32x98xf32>
    %cst_33 = arith.constant 0.000000e+00 : f32
    %80 = vector.broadcast %cst_33 : f32 to vector<32x98xf32>
    %81 = arith.maximumf %79, %80 : vector<32x98xf32>
    %82 = vector.broadcast %68 : vector<32x1xf32> to vector<32x98xf32>
    %83 = arith.mulf %42, %82 : vector<32x98xf32>
    %84 = vector.broadcast %69 : vector<32x1xf32> to vector<32x98xf32>
    %85 = arith.addf %83, %84 : vector<32x98xf32>
    %cst_34 = arith.constant 0.000000e+00 : f32
    %86 = vector.broadcast %cst_34 : f32 to vector<32x98xf32>
    %87 = arith.maximumf %85, %86 : vector<32x98xf32>
    %88 = vector.broadcast %68 : vector<32x1xf32> to vector<32x98xf32>
    %89 = arith.mulf %44, %88 : vector<32x98xf32>
    %90 = vector.broadcast %69 : vector<32x1xf32> to vector<32x98xf32>
    %91 = arith.addf %89, %90 : vector<32x98xf32>
    %cst_35 = arith.constant 0.000000e+00 : f32
    %92 = vector.broadcast %cst_35 : f32 to vector<32x98xf32>
    %93 = arith.maximumf %91, %92 : vector<32x98xf32>
    %94 = arith.maximumf %75, %81 : vector<32x98xf32>
    %95 = arith.maximumf %87, %93 : vector<32x98xf32>
    %96 = arith.maximumf %94, %95 : vector<32x98xf32>
    %97 = arith.truncf %96 : vector<32x98xf32> to vector<32x98xbf16>
    %c0_36 = arith.constant 0 : index
    %c0_37 = arith.constant 0 : index
    %98 = vector.load %arg5[%c0_36, %c0_37] : memref<32x98xbf16, #tpu.memory_space<vmem>>, vector<32x98xbf16>
    tpu.vector_store %arg5[%c0_36, %c0_37], %97 {strides = array<i32>} : memref<32x98xbf16, #tpu.memory_space<vmem>>, vector<32x98xbf16>,
    return
  }
}

module attributes {stable_mosaic.version = 11 : i64} {
  func.func @_linear_kernel(%arg0: memref<2x1568xbf16, #tpu.memory_space<vmem>>, %arg1: memref<1568x10xbf16, #tpu.memory_space<vmem>>, %arg2: memref<1x10xf32, #tpu.memory_space<vmem>>, %arg3: memref<2x10xf32, #tpu.memory_space<vmem>>) attributes {dimension_semantics = [], scalar_prefetch = 0 : i64, scratch_operands = 0 : i64, tpu.core_type = #tpu.core_type<tc>} {
    %c0 = arith.constant 0 : index
    %c0_0 = arith.constant 0 : index
    %0 = vector.load %arg0[%c0, %c0_0] : memref<2x1568xbf16, #tpu.memory_space<vmem>>, vector<2x1568xbf16>
    %c0_1 = arith.constant 0 : index
    %c0_2 = arith.constant 0 : index
    %1 = vector.load %arg1[%c0_1, %c0_2] : memref<1568x10xbf16, #tpu.memory_space<vmem>>, vector<1568x10xbf16>
    %cst = arith.constant dense<0.000000e+00> : vector<2x10xf32>
    %2 = tpu.matmul %0, %1, %cst {dimension_numbers = #tpu.dot_dimension_numbers<[1], [0], [0], [1], [0, 0, 1, 1], [], []>} : vector<2x1568xbf16>, vector<1568x10xbf16>, vector<2x10xf32> -> vector<2x10xf32>
    %c0_3 = arith.constant 0 : index
    %c0_4 = arith.constant 0 : index
    %3 = vector.load %arg2[%c0_3, %c0_4] : memref<1x10xf32, #tpu.memory_space<vmem>>, vector<1x10xf32>
    %4 = vector.broadcast %3 : vector<1x10xf32> to vector<2x10xf32>
    %5 = arith.addf %2, %4 : vector<2x10xf32>
    %c0_5 = arith.constant 0 : index
    %c0_6 = arith.constant 0 : index
    %6 = vector.load %arg3[%c0_5, %c0_6] : memref<2x10xf32, #tpu.memory_space<vmem>>, vector<2x10xf32>
    tpu.vector_store %arg3[%c0_5, %c0_6], %5 {strides = array<i32>} : memref<2x10xf32, #tpu.memory_space<vmem>>, vector<2x10xf32>,
    return
  }
}

</mosaic_0001>

<bundles_post_ra>
// kernel: convnet_forward.3
= control target key start
LH: loop header
LB: loop body
LE: loop exit
PB: predicated region body
PF: predicated region fallthrough
CT: control target
= control target key end

     0   :  { %vm88_vm0 = vcmask 1043456   ;;  %vm89_vm1 = vcmask 1044480   ;;  %v1115_v1 = vmov 65535   ;;  %v1116_v4 = vmov 0   ;;  %s1769_s0 = inlined_call_operand.vmem [shape: bf16[4,25,392], index: 0, kind: input, shape index: {}]   ;;  %s1770_s1 = inlined_call_operand.vmem [shape: bf16[16,25], index: 1, kind: input, shape index: {}]   ;;  %s1771_s2 = inlined_call_operand.vmem [shape: f32[16,1], index: 2, kind: input, shape index: {}]   ;;  %s1772_s3 = inlined_call_operand.vmem [shape: f32[16,1], index: 3, kind: input, shape index: {}]   ;;  %s1773_s4 = inlined_call_operand.vmem [shape: f32[16,1], index: 4, kind: input, shape index: {}]   ;;  %s1774_s5 = inlined_call_operand.vmem [shape: bf16[16,392], index: 5, kind: output, shape index: {}]  }
   0x1   :  { %v1062_v0 = vld [vmem:[%s1769_s0 + $0x4] ss:$16 sps:$4 sm:$0xff]   ;;  %v90_v2 = vsel %vm88_vm0, 4294967295, %v1115_v1  ;;  %v1064_v3 = vld [vmem:[%s1769_s0 + $0xc] ss:$16 sps:$4 sm:$0xff]   ;;  %136 = vmatprep.mubr.bf16.mxu0 %v1116_v4  ;;  %179 = vmatprep.mubr.bf16.mxu1 %v1116_v4  ;;  %vm84_vm2 = vcmask 203776  }
   0x2   :  { %104 = vmatprep.subr.bf16.mxu0 %v1062_v0  ;;  %v1066_v5 = vld [vmem:[%s1769_s0] ss:$16 sps:$4 sm:$0xff]   ;;  %v1067_v6 = vld [vmem:[%s1769_s0 + $0x8] ss:$16 sps:$4 sm:$0xff]   ;;  %v1162_v7 = vsel %vm89_vm1, %v90_v2, 0  ;;  %1060 = vset.pattern.permute.xlu0 %v1116_v4  ;;  %vm621_vm3 = vcmask 64512  }
   0x3   :  { %147 = vmatprep.subr.bf16.mxu1 %v1064_v3  ;;  %v1068_v8 = vld [vmem:[%s1769_s0 + $0x24] ss:$16 sps:$4 sm:$0x1f]   ;;  %1061 = vset.pattern.permute.xlu1 %v1116_v4  ;;  %v1070_v9 = vld [vmem:[%s1769_s0 + $0x2c] ss:$16 sps:$4 sm:$0x1f]  }
   0x4   :  { %105 = vmatpush1.bf16.msra.mxu0 %v1066_v5  ;;  %148 = vmatpush1.bf16.msra.mxu1 %v1067_v6  ;;  %v96_v10 = vand.u32 %v1068_v8, %v1162_v7  ;;  %v1072_v11 = vld [vmem:[%s1769_s0 + $0x20] ss:$16 sps:$4 sm:$0x1f]   ;;  %v1073_v12 = vld [vmem:[%s1769_s0 + $0x28] ss:$16 sps:$4 sm:$0x1f]   ;;  %v102_v13 = vand.u32 %v1070_v9, %v1162_v7 }
   0x5   :  { %v1183_v14 = vld [vmem:[%s1770_s1] sm:$0xff]   ;;  %v93_v15 = vand.u32 %v1072_v11, %v1162_v7  ;;  %v99_v16 = vand.u32 %v1073_v12, %v1162_v7  ;;  %v1078_v19 = vld [vmem:[%s1769_s0 + $0x48] ss:$16 sps:$4 sm:$0xff]   ;;  %v1080_v20 = vld [vmem:[%s1769_s0 + $0x4c] ss:$16 sps:$4 sm:$0xff]   ;;  %vm976_vm4 = vcmask 64516  }
   0x6   :  { %106 = vmatprep.subr.bf16.mxu0 %v96_v10  ;;  %v1075_v17 = vld [vmem:[%s1769_s0 + $0x40] ss:$16 sps:$4 sm:$0xff]   ;;  %149 = vmatprep.subr.bf16.mxu1 %v102_v13  ;;  %v1077_v18 = vld [vmem:[%s1769_s0 + $0x44] ss:$16 sps:$4 sm:$0xff]   ;;  %v1090_v31 = vld [vmem:[%s1769_s0 + $0x88] ss:$16 sps:$4 sm:$0xff]  }
   0x7   :  { %v1081_v21 = vld [vmem:[%s1769_s0 + $0x60] ss:$16 sps:$4 sm:$0x1f]   ;;  %v1083_v22 = vld [vmem:[%s1769_s0 + $0x64] ss:$16 sps:$4 sm:$0x1f]   ;;  %vm1737_vm5 = vmor %vm976_vm4, %vm88_vm0 }
   0x8   :  { %107 = vmatpush1.bf16.msra.mxu0 %v93_v15  ;;  %150 = vmatpush1.bf16.msra.mxu1 %v99_v16  ;;  %v1084_v23 = vld [vmem:[%s1769_s0 + $0x68] ss:$16 sps:$4 sm:$0x1f]   ;;  %v1086_v24 = vld [vmem:[%s1769_s0 + $0x6c] ss:$16 sps:$4 sm:$0x1f]   ;;  %v239_v25 = vand.u32 %v1083_v22, %v1162_v7  ;;  %v236_v26 = vand.u32 %v1081_v21, %v1162_v7 }
   0x9   :  { %247 = vmatprep.subr.bf16.mxu0 %v1077_v18  ;;  %290 = vmatprep.subr.bf16.mxu1 %v1080_v20  ;;  %v245_v27 = vand.u32 %v1086_v24, %v1162_v7  ;;  %v242_v28 = vand.u32 %v1084_v23, %v1162_v7  ;;  %v1089_v29 = vld [vmem:[%s1769_s0 + $0x84] ss:$16 sps:$4 sm:$0xff]   ;;  %v1087_v30 = vld [vmem:[%s1769_s0 + $0x80] ss:$16 sps:$4 sm:$0xff]   ;;  %v1092_v32 = vld [vmem:[%s1769_s0 + $0x8c] ss:$16 sps:$4 sm:$0xff]  }
   0xa   :  { %v1093_v33 = vld [vmem:[%s1769_s0 + $0xa0] ss:$16 sps:$4 sm:$0x1f]   ;;  %v1095_v34 = vld [vmem:[%s1769_s0 + $0xa4] ss:$16 sps:$4 sm:$0x1f]  }
   0xb   :  { %994 = vmatmul.mubr.msk.bf16.vlgmr.msra.gmra.mrb[0].mxu0 %vm84_vm2, %v1183_v14  ;;  %995 = vmatmul.mubr.msk.bf16.vlgmr.msra.gmra.mrb[0].mxu1 %vm84_vm2, %v1183_v14  ;;  %v1096_v35 = vld [vmem:[%s1769_s0 + $0xa8] ss:$16 sps:$4 sm:$0x1f]   ;;  %v382_v36 = vand.u32 %v1095_v34, %v1162_v7  ;;  %v1098_v37 = vld [vmem:[%s1769_s0 + $0xac] ss:$16 sps:$4 sm:$0x1f]   ;;  %v379_v40 = vand.u32 %v1093_v33, %v1162_v7 }
   0xc   :  { %248 = vmatpush1.bf16.msra.mxu0 %v1075_v17  ;;  %291 = vmatpush1.bf16.msra.mxu1 %v1078_v19  ;;  %v388_v38 = vand.u32 %v1098_v37, %v1162_v7  ;;  %v1101_v39 = vld [vmem:[%s1769_s0 + $0xc4] ss:$16 sps:$4 sm:$0xff]   ;;  %v385_v41 = vand.u32 %v1096_v35, %v1162_v7  ;;  %v1104_v42 = vld [vmem:[%s1769_s0 + $0xcc] ss:$16 sps:$4 sm:$0xff]   ;;  %v1099_v45 = vld [vmem:[%s1769_s0 + $0xc0] ss:$16 sps:$4 sm:$0xff]  }
   0xd   :  { %279 = vmatprep.mubr.bf16.mxu0 %v1116_v4  ;;  %322 = vmatprep.mubr.bf16.mxu1 %v1116_v4  ;;  %v1107_v43 = vld [vmem:[%s1769_s0 + $0xe4] ss:$16 sps:$4 sm:$0x1f]   ;;  %v1110_v44 = vld [vmem:[%s1769_s0 + $0xec] ss:$16 sps:$4 sm:$0x1f]  }
   0xe   :  { %249 = vmatprep.subr.bf16.mxu0 %v239_v25  ;;  %292 = vmatprep.subr.bf16.mxu1 %v245_v27  ;;  %v1102_v46 = vld [vmem:[%s1769_s0 + $0xc8] ss:$16 sps:$4 sm:$0xff]   ;;  %v23_v47 = vld [vmem:[%s1771_s2] sm:$0xff]  ;;  %v525_v50 = vand.u32 %v1107_v43, %v1162_v7  ;;  %v531_v51 = vand.u32 %v1110_v44, %v1162_v7 }
   0xf   :  { %v1105_v48 = vld [vmem:[%s1769_s0 + $0xe0] ss:$16 sps:$4 sm:$0x1f]   ;;  %v1108_v49 = vld [vmem:[%s1769_s0 + $0xe8] ss:$16 sps:$4 sm:$0x1f]   ;;  %35 = vperm.xlu0 %1060, %v23_v47  }
  0x10   :  { %250 = vmatpush1.bf16.msra.mxu0 %v236_v26  ;;  %293 = vmatpush1.bf16.msra.mxu1 %v242_v28  ;;  %v522_v52 = vand.u32 %v1105_v48, %v1162_v7  ;;  %v528_v53 = vand.u32 %v1108_v49, %v1162_v7  ;;  %v24_v54 = vld [vmem:[%s1771_s2 + $0x8] sm:$0xff] }
  0x11   :  { %390 = vmatprep.subr.bf16.mxu0 %v1089_v29  ;;  %433 = vmatprep.subr.bf16.mxu1 %v1092_v32 }
  0x13   :  { %1012 = vmatmul.mubr.msk.bf16.vlgmr.msra.gmra.mrb[4].mxu0 %vm84_vm2, %v1183_v14  ;;  %1013 = vmatmul.mubr.msk.bf16.vlgmr.msra.gmra.mrb[4].mxu1 %vm84_vm2, %v1183_v14 }
  0x14   :  { %391 = vmatpush1.bf16.msra.mxu0 %v1087_v30  ;;  %434 = vmatpush1.bf16.msra.mxu1 %v1090_v31 }
  0x15   :  { %392 = vmatprep.subr.bf16.mxu0 %v382_v36  ;;  %435 = vmatprep.subr.bf16.mxu1 %v388_v38 }
  0x16   :  { %422 = vmatprep.mubr.bf16.mxu0 %v1116_v4  ;;  %465 = vmatprep.mubr.bf16.mxu1 %v1116_v4 }
  0x17   :  { %40 = vperm.xlu0 %1060, %v24_v54  }
  0x18   :  { %393 = vmatpush1.bf16.msra.mxu0 %v379_v40  ;;  %436 = vmatpush1.bf16.msra.mxu1 %v385_v41 }
  0x19   :  { %533 = vmatprep.subr.bf16.mxu0 %v1101_v39  ;;  %576 = vmatprep.subr.bf16.mxu1 %v1104_v42 }
  0x1b   :  { %1030 = vmatmul.mubr.msk.bf16.vlgmr.msra.gmra.mrb[8].mxu0 %vm84_vm2, %v1183_v14  ;;  %1031 = vmatmul.mubr.msk.bf16.vlgmr.msra.gmra.mrb[8].mxu1 %vm84_vm2, %v1183_v14 }
  0x1c   :  { %534 = vmatpush1.bf16.msra.mxu0 %v1099_v45  ;;  %577 = vmatpush1.bf16.msra.mxu1 %v1102_v46 }
  0x1d   :  { %535 = vmatprep.subr.bf16.mxu0 %v525_v50  ;;  %578 = vmatprep.subr.bf16.mxu1 %v531_v51 }
  0x1e   :  { %565 = vmatprep.mubr.bf16.mxu0 %v1116_v4  ;;  %608 = vmatprep.mubr.bf16.mxu1 %v1116_v4 }
  0x20   :  { %536 = vmatpush1.bf16.msra.mxu0 %v522_v52  ;;  %579 = vmatpush1.bf16.msra.mxu1 %v528_v53 }
  0x23   :  { %1048 = vmatmul.mubr.msk.bf16.vlgmr.msra.gmra.mrb[12].mxu0 %vm84_vm2, %v1183_v14  ;;  %1049 = vmatmul.mubr.msk.bf16.vlgmr.msra.gmra.mrb[12].mxu1 %vm84_vm2, %v1183_v14 }
  0x8e   :  { %v1299_v55 = vpop.permute.xlu0 %35 }
  0x96   :  { %v1301_v56 = vpop.permute.xlu0 %40 }
  0xde   :  { %v138_v57 = vpop.f32.mrb[0].mxu0  ;;  %v181_v58 = vpop.f32.mrb[0].mxu1 }
  0xdf   :  { %v1304_v59 = vadd.f32 %v138_v57, %v1299_v55  ;;  %v140_v60 = vpop.f32.mrb[1].mxu0  ;;  %v183_v61 = vpop.f32.mrb[1].mxu1  ;;  %v1310_v63 = vadd.f32 %v181_v58, %v1299_v55 }
  0xe0   :  { %v1307_v62 = vadd.f32 %v140_v60, %v1299_v55  ;;  %v142_v0 = vpop.f32.mrb[2].mxu0  ;;  %v1313_v1 = vadd.f32 %v183_v61, %v1299_v55  ;;  %v185_v2 = vpop.f32.mrb[2].mxu1 }
  0xe1   :  { %v1316_v3 = vadd.f32 %v142_v0, %v1301_v56  ;;  %v144_v4 = vpop.f32.mrb[3].mxu0  ;;  %v187_v5 = vpop.f32.mrb[3].mxu1  ;;  %v1328_v10 = vadd.f32 %v185_v2, %v1301_v56 }
  0xe2   :  { %v619_v6 = vadd.f32 %v1307_v62, %v1304_v59  ;;  %v1321_v7 = vadd.f32 %v144_v4, %v1301_v56  ;;  %v622_v8 = vsel %vm621_vm3, %v1313_v1, 0.0  ;;  %v1332_v12 = vadd.f32 %v187_v5, %v1301_v56 }
  0xe4   :  { %v626_v9 = vadd.f32 %v1321_v7, %v1316_v3  ;;  %v620_v11 = vadd.f32 %v619_v6, %v1310_v63  ;;  %v628_v27 = vsel %vm621_vm3, %v1332_v12, 0.0 }
  0xe6   :  { %v627_v13 = vadd.f32 %v626_v9, %v1328_v10  ;;  %v281_v14 = vpop.f32.mrb[4].mxu0  ;;  %v324_v15 = vpop.f32.mrb[4].mxu1  ;;  %v623_v16 = vadd.f32 %v622_v8, %v620_v11 }
  0xe7   :  { %v1336_v17 = vadd.f32 %v281_v14, %v1299_v55  ;;  %v283_v18 = vpop.f32.mrb[5].mxu0  ;;  %v326_v19 = vpop.f32.mrb[5].mxu1  ;;  %v1350_v28 = vadd.f32 %v324_v15, %v1299_v55 }
  0xe8   :  { %v1339_v20 = vadd.f32 %v283_v18, %v1299_v55  ;;  %v285_v21 = vpop.f32.mrb[6].mxu0  ;;  %v328_v22 = vpop.f32.mrb[6].mxu1  ;;  %624 = vadd.xlane.f32.xlu1 %v623_v16  ;;  %v1342_v23 = vadd.f32 %v326_v19, %v1299_v55  ;;  %v629_v31 = vadd.f32 %v628_v27, %v627_v13 }
  0xe9   :  { %v1345_v24 = vadd.f32 %v285_v21, %v1301_v56  ;;  %v287_v25 = vpop.f32.mrb[7].mxu0  ;;  %v330_v26 = vpop.f32.mrb[7].mxu1  ;;  %v1361_v33 = vadd.f32 %v328_v22, %v1301_v56 }
  0xea   :  { %v634_v29 = vadd.f32 %v1339_v20, %v1336_v17  ;;  %v1355_v30 = vadd.f32 %v287_v25, %v1301_v56  ;;  %v1358_v32 = vadd.f32 %v330_v26, %v1301_v56  ;;  %v636_v36 = vsel %vm621_vm3, %v1342_v23, 0.0 }
  0xec   :  { %v640_v34 = vadd.f32 %v1355_v30, %v1345_v24  ;;  %630 = vadd.xlane.f32.xlu1 %v629_v31  ;;  %v635_v35 = vadd.f32 %v634_v29, %v1350_v28  ;;  %v642_v44 = vsel %vm621_vm3, %v1358_v32, 0.0 }
  0xee   :  { %v424_v37 = vpop.f32.mrb[8].mxu0  ;;  %v467_v38 = vpop.f32.mrb[8].mxu1  ;;  %v637_v39 = vadd.f32 %v636_v36, %v635_v35  ;;  %v641_v40 = vadd.f32 %v640_v34, %v1361_v33 }
  0xef   :  { %v1370_v41 = vadd.f32 %v424_v37, %v1299_v55  ;;  %v426_v42 = vpop.f32.mrb[9].mxu0  ;;  %v469_v43 = vpop.f32.mrb[9].mxu1  ;;  %v1384_v53 = vadd.f32 %v467_v38, %v1299_v55 }
  0xf0   :  { %v1375_v45 = vadd.f32 %v426_v42, %v1299_v55  ;;  %v428_v46 = vpop.f32.mrb[10].mxu0  ;;  %v471_v47 = vpop.f32.mrb[10].mxu1  ;;  %638 = vadd.xlane.f32.xlu0 %v637_v39  ;;  %v643_v48 = vadd.f32 %v642_v44, %v641_v40  ;;  %v1378_v49 = vadd.f32 %v469_v43, %v1299_v55 }
  0xf1   :  { %v1381_v50 = vadd.f32 %v428_v46, %v1301_v56  ;;  %v430_v51 = vpop.f32.mrb[11].mxu0  ;;  %v473_v52 = vpop.f32.mrb[11].mxu1  ;;  %v1392_v58 = vadd.f32 %v471_v47, %v1301_v56 }
  0xf2   :  { %v648_v54 = vadd.f32 %v1375_v45, %v1370_v41  ;;  %v1389_v57 = vadd.f32 %v430_v51, %v1301_v56  ;;  %644 = vadd.xlane.f32.xlu1 %v643_v48  ;;  %v1398_v0 = vadd.f32 %v473_v52, %v1301_v56  ;;  %v650_v2 = vsel %vm621_vm3, %v1378_v49, 0.0 }
  0xf4   :  { %v654_v60 = vadd.f32 %v1389_v57, %v1381_v50  ;;  %v649_v61 = vadd.f32 %v648_v54, %v1384_v53  ;;  %v656_v25 = vsel %vm621_vm3, %v1398_v0, 0.0 }
  0xf6   :  { %v567_v4 = vpop.f32.mrb[12].mxu0  ;;  %v610_v5 = vpop.f32.mrb[12].mxu1  ;;  %v651_v6 = vadd.f32 %v650_v2, %v649_v61  ;;  %v655_v8 = vadd.f32 %v654_v60, %v1392_v58 }
  0xf7   :  { %v1404_v9 = vadd.f32 %v567_v4, %v1299_v55  ;;  %v569_v11 = vpop.f32.mrb[13].mxu0  ;;  %v612_v13 = vpop.f32.mrb[13].mxu1  ;;  %v1418_v26 = vadd.f32 %v610_v5, %v1299_v55 }
  0xf8   :  { %v1407_v14 = vadd.f32 %v569_v11, %v1299_v55  ;;  %v571_v15 = vpop.f32.mrb[14].mxu0  ;;  %v614_v16 = vpop.f32.mrb[14].mxu1  ;;  %652 = vadd.xlane.f32.xlu1 %v651_v6  ;;  %v1410_v18 = vadd.f32 %v612_v13, %v1299_v55  ;;  %v657_v31 = vadd.f32 %v656_v25, %v655_v8 }
  0xf9   :  { %v1413_v19 = vadd.f32 %v571_v15, %v1301_v56  ;;  %v573_v21 = vpop.f32.mrb[15].mxu0  ;;  %v616_v22 = vpop.f32.mrb[15].mxu1  ;;  %v1426_v34 = vadd.f32 %v614_v16, %v1301_v56 }
  0xfa   :  { %v662_v27 = vadd.f32 %v1407_v14, %v1404_v9  ;;  %v1423_v29 = vadd.f32 %v573_v21, %v1301_v56  ;;  %v1432_v37 = vadd.f32 %v616_v22, %v1301_v56  ;;  %v664_v55 = vsel %vm621_vm3, %v1410_v18, 0.0 }
  0xfc   :  { %v668_v35 = vadd.f32 %v1423_v29, %v1413_v19  ;;  %658 = vadd.xlane.f32.xlu1 %v657_v31  ;;  %v663_v36 = vadd.f32 %v662_v27, %v1418_v26  ;;  %v670_v40 = vsel %vm621_vm3, %v1432_v37, 0.0 }
  0xfe   :  { %v665_v38 = vadd.f32 %v664_v55, %v663_v36  ;;  %v669_v39 = vadd.f32 %v668_v35, %v1426_v34 }
 0x100   :  { %666 = vadd.xlane.f32.xlu1 %v665_v38  ;;  %v671_v42 = vadd.f32 %v670_v40, %v669_v39 }
 0x104   :  { %672 = vadd.xlane.f32.xlu1 %v671_v42 }
 0x175   :  { %v625_v43 = vpop.xlane.xlu1 %624 }
 0x179   :  { %v631_v44 = vpop.xlane.xlu1 %630 }
 0x17d   :  { %v639_v48 = vpop.xlane.xlu0 %638 }
 0x17e   :  { %v646_v56 = vadd.f32 %v639_v48, %v625_v43 }
 0x17f   :  { %v645_v46 = vpop.xlane.xlu1 %644 }
 0x180   :  { %v647_v60 = vadd.f32 %v645_v46, %v631_v44 }
 0x185   :  { %v653_v47 = vpop.xlane.xlu1 %652 }
 0x186   :  { %v660_v52 = vadd.f32 %v653_v47, %v646_v56 }
 0x189   :  { %v659_v51 = vpop.xlane.xlu1 %658 }
 0x18a   :  { %v661_v2 = vadd.f32 %v659_v51, %v647_v60 }
 0x18d   :  { %v667_v54 = vpop.xlane.xlu1 %666 }
 0x18e   :  { %v674_v61 = vadd.f32 %v667_v54, %v660_v52 }
 0x190   :  { %v1439_v4 = vmul.f32 0.0006377551, %v674_v61 }
 0x191   :  { %v673_v5 = vpop.xlane.xlu1 %672 }
 0x192   :  { %v675_v6 = vadd.f32 %v673_v5, %v661_v2  ;;  %v1443_v8 = vsub.f32 %v1304_v59, %v1439_v4  ;;  %v1447_v11 = vsub.f32 %v1307_v62, %v1439_v4  ;;  %v1451_v13 = vsub.f32 %v1310_v63, %v1439_v4 }
 0x193   :  { %v1455_v15 = vsub.f32 %v1313_v1, %v1439_v4  ;;  %v1459_v16 = vsub.f32 %v1336_v17, %v1439_v4  ;;  %v1463_v59 = vsub.f32 %v1339_v20, %v1439_v4  ;;  %v1467_v62 = vsub.f32 %v1350_v28, %v1439_v4 }
 0x194   :  { %v1469_v21 = vmul.f32 0.0006377551, %v675_v6  ;;  %v711_v63 = vmul.f32 %v1443_v8, %v1443_v8  ;;  %v712_v1 = vmul.f32 %v1447_v11, %v1447_v11  ;;  %v713_v17 = vmul.f32 %v1451_v13, %v1451_v13 }
 0x195   :  { %v714_v22 = vmul.f32 %v1455_v15, %v1455_v15  ;;  %v1481_v20 = vsub.f32 %v1342_v23, %v1439_v4  ;;  %v733_v28 = vmul.f32 %v1459_v16, %v1459_v16  ;;  %v734_v25 = vmul.f32 %v1463_v59, %v1463_v59 }
 0x196   :  { %v719_v27 = vadd.f32 %v712_v1, %v711_v63  ;;  %v735_v31 = vmul.f32 %v1467_v62, %v1467_v62  ;;  %v1491_v35 = vsub.f32 %v1345_v24, %v1469_v21  ;;  %v1495_v36 = vsub.f32 %v1355_v30, %v1469_v21 }
 0x197   :  { %v721_v23 = vsel %vm621_vm3, %v714_v22, 0.0  ;;  %v736_v55 = vmul.f32 %v1481_v20, %v1481_v20  ;;  %v741_v38 = vadd.f32 %v734_v25, %v733_v28  ;;  %v1502_v39 = vsub.f32 %v1361_v33, %v1469_v21 }
 0x198   :  { %v720_v40 = vadd.f32 %v719_v27, %v713_v17  ;;  %v1506_v42 = vsub.f32 %v1358_v32, %v1469_v21  ;;  %v737_v24 = vmul.f32 %v1491_v35, %v1491_v35  ;;  %v738_v30 = vmul.f32 %v1495_v36, %v1495_v36 }
 0x199   :  { %v742_v43 = vadd.f32 %v741_v38, %v735_v31  ;;  %v743_v44 = vsel %vm621_vm3, %v736_v55, 0.0  ;;  %v739_v46 = vmul.f32 %v1502_v39, %v1502_v39  ;;  %v1517_v33 = vsub.f32 %v1370_v41, %v1439_v4 }
 0x19a   :  { %v722_v47 = vadd.f32 %v721_v23, %v720_v40  ;;  %v740_v32 = vmul.f32 %v1506_v42, %v1506_v42  ;;  %v747_v48 = vadd.f32 %v738_v30, %v737_v24  ;;  %v1523_v51 = vsub.f32 %v1375_v45, %v1439_v4 }
 0x19b   :  { %v744_v56 = vadd.f32 %v743_v44, %v742_v43  ;;  %v1527_v52 = vsub.f32 %v1384_v53, %v1439_v4  ;;  %v1531_v54 = vsub.f32 %v1378_v49, %v1439_v4  ;;  %v755_v41 = vmul.f32 %v1517_v33, %v1517_v33 }
 0x19c   :  { %723 = vadd.xlane.f32.xlu1 %v722_v47  ;;  %v748_v60 = vadd.f32 %v747_v48, %v739_v46  ;;  %v749_v61 = vsel %vm621_vm3, %v740_v32, 0.0  ;;  %v756_v45 = vmul.f32 %v1523_v51, %v1523_v51  ;;  %v1540_v2 = vsub.f32 %v1381_v50, %v1469_v21 }
 0x19d   :  { %v757_v53 = vmul.f32 %v1527_v52, %v1527_v52  ;;  %v758_v49 = vmul.f32 %v1531_v54, %v1531_v54  ;;  %v1548_v5 = vsub.f32 %v1389_v57, %v1469_v21  ;;  %v1552_v6 = vsub.f32 %v1392_v58, %v1469_v21 }
 0x19e   :  { %v750_v63 = vadd.f32 %v749_v61, %v748_v60  ;;  %v763_v1 = vadd.f32 %v756_v45, %v755_v41  ;;  %v1556_v50 = vsub.f32 %v1398_v0, %v1469_v21  ;;  %v759_v17 = vmul.f32 %v1540_v2, %v1540_v2 }
 0x19f   :  { %v760_v22 = vmul.f32 %v1548_v5, %v1548_v5  ;;  %v761_v57 = vmul.f32 %v1552_v6, %v1552_v6  ;;  %v1566_v28 = vsub.f32 %v1413_v19, %v1469_v21  ;;  %v765_v25 = vsel %vm621_vm3, %v758_v49, 0.0 }
 0x1a0   :  { %745 = vadd.xlane.f32.xlu1 %v744_v56  ;;  %751 = vadd.xlane.f32.xlu0 %v750_v63  ;;  %v764_v58 = vadd.f32 %v763_v1, %v757_v53  ;;  %v762_v0 = vmul.f32 %v1556_v50, %v1556_v50  ;;  %v1573_v27 = vsub.f32 %v1423_v29, %v1469_v21 }
 0x1a1   :  { %v769_v31 = vadd.f32 %v760_v22, %v759_v17  ;;  %v1577_v23 = vsub.f32 %v1426_v34, %v1469_v21  ;;  %v1581_v19 = vsub.f32 %v1432_v37, %v1469_v21  ;;  %v781_v55 = vmul.f32 %v1566_v28, %v1566_v28 }
 0x1a2   :  { %v766_v38 = vadd.f32 %v765_v25, %v764_v58  ;;  %v771_v40 = vsel %vm621_vm3, %v762_v0, 0.0  ;;  %v782_v24 = vmul.f32 %v1573_v27, %v1573_v27  ;;  %v1590_v29 = vsub.f32 %v1316_v3, %v1469_v21 }
 0x1a3   :  { %v770_v30 = vadd.f32 %v769_v31, %v761_v57  ;;  %v783_v34 = vmul.f32 %v1577_v23, %v1577_v23  ;;  %v784_v37 = vmul.f32 %v1581_v19, %v1581_v19  ;;  %v1598_v43 = vsub.f32 %v1321_v7, %v1469_v21 }
 0x1a4   :  { %767 = vadd.xlane.f32.xlu1 %v766_v38  ;;  %v791_v44 = vadd.f32 %v782_v24, %v781_v55  ;;  %v1602_v46 = vsub.f32 %v1328_v10, %v1469_v21  ;;  %v1606_v3 = vsub.f32 %v1332_v12, %v1469_v21  ;;  %v715_v47 = vmul.f32 %v1590_v29, %v1590_v29 }
 0x1a5   :  { %v772_v32 = vadd.f32 %v771_v40, %v770_v30  ;;  %v716_v48 = vmul.f32 %v1598_v43, %v1598_v43  ;;  %v1614_v7 = vsub.f32 %v1404_v9, %v1439_v4  ;;  %v1622_v12 = vsub.f32 %v1407_v14, %v1439_v4 }
 0x1a6   :  { %v792_v56 = vadd.f32 %v791_v44, %v783_v34  ;;  %v717_v10 = vmul.f32 %v1602_v46, %v1602_v46  ;;  %v718_v41 = vmul.f32 %v1606_v3, %v1606_v3  ;;  %v1626_v60 = vsub.f32 %v1418_v26, %v1439_v4 }
 0x1a7   :  { %773 = vadd.xlane.f32.xlu0 %v772_v32  ;;  %v725_v21 = vadd.f32 %v716_v48, %v715_v47  ;;  %v1630_v9 = vsub.f32 %v1410_v18, %v1439_v4  ;;  %v777_v61 = vmul.f32 %v1614_v7, %v1614_v7  ;;  %v793_v45 = vsel %vm621_vm3, %v784_v37, 0.0 }
 0x1a8   :  { %v778_v53 = vmul.f32 %v1622_v12, %v1622_v12  ;;  %v794_v14 = vadd.f32 %v793_v45, %v792_v56  ;;  %v727_v63 = vsel %vm621_vm3, %v718_v41, 0.0  ;;  %v779_v26 = vmul.f32 %v1626_v60, %v1626_v60 }
 0x1a9   :  { %v726_v49 = vadd.f32 %v725_v21, %v717_v10  ;;  %v780_v1 = vmul.f32 %v1630_v9, %v1630_v9  ;;  %v806_v21 = vld [vmem:[%s1772_s3 + $0x8] sm:$0xff] }
 0x1aa   :  { %v785_v18 = vadd.f32 %v778_v53, %v777_v61  ;;  %v805_v61 = vld [vmem:[%s1772_s3] sm:$0xff] }
 0x1ab   :  { %795 = vadd.xlane.f32.xlu0 %v794_v14  ;;  %v728_v4 = vadd.f32 %v727_v63, %v726_v49  ;;  %v787_v22 = vsel %vm621_vm3, %v780_v1, 0.0  ;;  %v809_v63 = vld [vmem:[%s1773_s4] sm:$0xff] }
 0x1ac   :  { %v786_v17 = vadd.f32 %v785_v18, %v779_v26  ;;  %v810_v26 = vld [vmem:[%s1773_s4 + $0x8] sm:$0xff] }
 0x1ad   :  { %729 = vadd.xlane.f32.xlu1 %v728_v4 }
 0x1ae   :  { %v788_v57 = vadd.f32 %v787_v22, %v786_v17 }
 0x1b1   :  { %789 = vadd.xlane.f32.xlu1 %v788_v57 }
 0x229   :  { %v724_v58 = vpop.xlane.xlu1 %723 }
 0x22d   :  { %v746_v25 = vpop.xlane.xlu1 %745  ;;  %v752_v0 = vpop.xlane.xlu0 %751 }
 0x22e   :  { %v753_v40 = vadd.f32 %v746_v25, %v724_v58 }
 0x231   :  { %v768_v31 = vpop.xlane.xlu1 %767 }
 0x232   :  { %v775_v30 = vadd.f32 %v768_v31, %v753_v40 }
 0x234   :  { %v774_v55 = vpop.xlane.xlu0 %773 }
 0x238   :  { %v796_v37 = vpop.xlane.xlu0 %795 }
 0x23a   :  { %v730_v38 = vpop.xlane.xlu1 %729 }
 0x23b   :  { %v754_v24 = vadd.f32 %v752_v0, %v730_v38 }
 0x23d   :  { %v776_v34 = vadd.f32 %v774_v55, %v754_v24 }
 0x23e   :  { %v790_v44 = vpop.xlane.xlu1 %789 }
 0x23f   :  { %v798_v47 = vadd.f32 %v796_v37, %v776_v34  ;;  %v797_v32 = vadd.f32 %v790_v44, %v775_v30 }
 0x241   :  { %v800_v48 = vmul.f32 0.0006377551, %v798_v47  ;;  %v799_v56 = vmul.f32 0.0006377551, %v797_v32 }
 0x243   :  { %v802_v10 = vadd.f32 1e-05, %v800_v48  ;;  %v801_v41 = vadd.f32 1e-05, %v799_v56 }
 0x245   :  { %1111 = vrsqrt.f32 %v802_v10 }
 0x246   :  { %1113 = vrsqrt.f32 %v801_v41 }
 0x24f   :  { %v1112_v45 = vpop.eup %1111 }
 0x250   :  { %v1114_v53 = vpop.eup %1113  ;;  %v808_v14 = vmul.f32 %v1112_v45, %v806_v21 }
 0x251   :  { %v807_v49 = vmul.f32 %v1114_v53, %v805_v61 }
 0x252   :  { %818 = vperm.xlu0 %1060, %v808_v14  }
 0x253   :  { %813 = vperm.xlu1 %1061, %v807_v49  }
 0x257   :  { %831 = vperm.xlu1 %1061, %v809_v63  }
 0x25b   :  { %836 = vperm.xlu1 %1061, %v810_v26  }
 0x2d1   :  { %v1655_v1 = vpop.permute.xlu0 %818 }
 0x2d2   :  { %v1659_v18 = vmul.f32 %v1655_v1, %v1590_v29  ;;  %v1663_v4 = vmul.f32 %v1655_v1, %v1598_v43  ;;  %v814_v17 = vpop.permute.xlu1 %813  ;;  %v1667_v22 = vmul.f32 %v1655_v1, %v1602_v46  ;;  %v1671_v57 = vmul.f32 %v1655_v1, %v1606_v3 }
 0x2d3   :  { %v1675_v58 = vmul.f32 %v1655_v1, %v1491_v35  ;;  %v1679_v29 = vmul.f32 %v1655_v1, %v1495_v36  ;;  %v1683_v43 = vmul.f32 %v1655_v1, %v1502_v39  ;;  %v1687_v46 = vmul.f32 %v1655_v1, %v1506_v42 }
 0x2d4   :  { %v1691_v3 = vmul.f32 %v1655_v1, %v1540_v2  ;;  %v1695_v35 = vmul.f32 %v1655_v1, %v1548_v5  ;;  %v1699_v36 = vmul.f32 %v1655_v1, %v1552_v6  ;;  %v1703_v39 = vmul.f32 %v1655_v1, %v1556_v50 }
 0x2d5   :  { %v1707_v42 = vmul.f32 %v1655_v1, %v1566_v28  ;;  %v1711_v2 = vmul.f32 %v1655_v1, %v1573_v27  ;;  %v821_v25 = vmul.f32 %v814_v17, %v1443_v8  ;;  %v822_v5 = vmul.f32 %v814_v17, %v1447_v11 }
 0x2d6   :  { %v823_v0 = vmul.f32 %v814_v17, %v1451_v13  ;;  %v824_v6 = vmul.f32 %v814_v17, %v1455_v15  ;;  %v855_v31 = vmul.f32 %v814_v17, %v1459_v16  ;;  %v856_v50 = vmul.f32 %v814_v17, %v1463_v59  ;;  %v832_v38 = vpop.permute.xlu1 %831 }
 0x2d7   :  { %v857_v55 = vmul.f32 %v814_v17, %v1467_v62  ;;  %v858_v28 = vmul.f32 %v814_v17, %v1481_v20  ;;  %v879_v27 = vmul.f32 %v814_v17, %v1517_v33  ;;  %v880_v40 = vmul.f32 %v814_v17, %v1523_v51 }
 0x2d8   :  { %v881_v8 = vmul.f32 %v814_v17, %v1527_v52  ;;  %v882_v11 = vmul.f32 %v814_v17, %v1531_v54  ;;  %v903_v13 = vmul.f32 %v814_v17, %v1614_v7  ;;  %v904_v15 = vmul.f32 %v814_v17, %v1622_v12 }
 0x2d9   :  { %v905_v16 = vmul.f32 %v814_v17, %v1626_v60  ;;  %v906_v59 = vmul.f32 %v814_v17, %v1630_v9  ;;  %v839_v62 = vadd.f32 %v832_v38, %v821_v25  ;;  %v840_v24 = vadd.f32 %v832_v38, %v822_v5 }
 0x2da   :  { %v841_v20 = vadd.f32 %v832_v38, %v823_v0  ;;  %v842_v30 = vadd.f32 %v832_v38, %v824_v6  ;;  %v863_v33 = vadd.f32 %v855_v31, %v832_v38  ;;  %v864_v34 = vadd.f32 %v856_v50, %v832_v38  ;;  %v837_v0 = vpop.permute.xlu1 %836 }
 0x2db   :  { %v865_v51 = vadd.f32 %v857_v55, %v832_v38  ;;  %v866_v37 = vadd.f32 %v858_v28, %v832_v38  ;;  %v847_v52 = vmax.f32 %v839_v62, 0.0  ;;  %v848_v44 = vmax.f32 %v840_v24, 0.0 }
 0x2dc   :  { %v849_v54 = vmax.f32 %v841_v20, 0.0  ;;  %v850_v47 = vmax.f32 %v842_v30, 0.0  ;;  %v871_v7 = vmax.f32 %v863_v33, 0.0  ;;  %v872_v32 = vmax.f32 %v864_v34, 0.0 }
 0x2dd   :  { %v873_v12 = vmax.f32 %v865_v51, 0.0  ;;  %v874_v48 = vmax.f32 %v866_v37, 0.0  ;;  %v887_v60 = vadd.f32 %v879_v27, %v832_v38  ;;  %v888_v56 = vadd.f32 %v880_v40, %v832_v38 }
 0x2de   :  { %v889_v9 = vadd.f32 %v881_v8, %v832_v38  ;;  %v890_v10 = vadd.f32 %v882_v11, %v832_v38  ;;  %v911_v41 = vadd.f32 %v903_v13, %v832_v38  ;;  %v912_v21 = vadd.f32 %v904_v15, %v832_v38 }
 0x2df   :  { %v913_v61 = vadd.f32 %v905_v16, %v832_v38  ;;  %v914_v45 = vadd.f32 %v906_v59, %v832_v38  ;;  %v895_v53 = vmax.f32 %v887_v60, 0.0  ;;  %v896_v14 = vmax.f32 %v888_v56, 0.0 }
 0x2e0   :  { %v897_v49 = vmax.f32 %v889_v9, 0.0  ;;  %v898_v63 = vmax.f32 %v890_v10, 0.0  ;;  %v919_v26 = vmax.f32 %v911_v41, 0.0  ;;  %v920_v17 = vmax.f32 %v912_v21, 0.0 }
 0x2e1   :  { %v921_v25 = vmax.f32 %v913_v61, 0.0  ;;  %v922_v5 = vmax.f32 %v914_v45, 0.0  ;;  %v927_v6 = vmax.f32 %v847_v52, %v871_v7  ;;  %v928_v31 = vmax.f32 %v848_v44, %v872_v32 }
 0x2e2   :  { %v929_v50 = vmax.f32 %v849_v54, %v873_v12  ;;  %v930_v55 = vmax.f32 %v850_v47, %v874_v48  ;;  %v935_v28 = vmax.f32 %v895_v53, %v919_v26  ;;  %v936_v27 = vmax.f32 %v896_v14, %v920_v17 }
 0x2e3   :  { %v937_v40 = vmax.f32 %v897_v49, %v921_v25  ;;  %v938_v8 = vmax.f32 %v898_v63, %v922_v5  ;;  %v909_v38 = vmul.f32 %v1655_v1, %v1577_v23  ;;  %v910_v11 = vmul.f32 %v1655_v1, %v1581_v19 }
 0x2e4   :  { %v843_v13 = vadd.f32 %v837_v0, %v1659_v18  ;;  %v844_v15 = vadd.f32 %v837_v0, %v1663_v4  ;;  %v943_v16 = vmax.f32 %v927_v6, %v935_v28  ;;  %v944_v59 = vmax.f32 %v928_v31, %v936_v27 }
 0x2e5   :  { %v945_v62 = vmax.f32 %v929_v50, %v937_v40  ;;  %v946_v24 = vmax.f32 %v930_v55, %v938_v8  ;;  %v845_v30 = vadd.f32 %v837_v0, %v1667_v22  ;;  %v846_v23 = vadd.f32 %v837_v0, %v1671_v57 }
 0x2e6   :  { %v851_v33 = vmax.f32 %v843_v13, 0.0  ;;  %v852_v19 = vmax.f32 %v844_v15, 0.0  ;;  %v1054_v1 = vpack.c.bf16 %v944_v59, %v943_v16  ;;  %v867_v4 = vadd.f32 %v1675_v58, %v837_v0 }
 0x2e7   :  { %v1055_v18 = vpack.c.bf16 %v946_v24, %v945_v62  ;;  %v868_v34 = vadd.f32 %v1679_v29, %v837_v0  ;;  %v869_v51 = vadd.f32 %v1683_v43, %v837_v0  ;;  %v870_v37 = vadd.f32 %v1687_v46, %v837_v0 }
 0x2e8   :  { %v891_v52 = vadd.f32 %v1691_v3, %v837_v0  ;;  %v892_v44 = vadd.f32 %v1695_v35, %v837_v0  ;;  %975 = vst [vmem:[%s1774_s5] sm:$0xff] %v1054_v1  ;;  %v875_v22 = vmax.f32 %v867_v4, 0.0  ;;  %v893_v58 = vadd.f32 %v1699_v36, %v837_v0 }
 0x2e9   :  { %978 = vst.msk [vmem:[%s1774_s5 + $0x8] sm:$0xff] %vm1737_vm5, %v1055_v18  ;;  %v876_v57 = vmax.f32 %v868_v34, 0.0  ;;  %v894_v29 = vadd.f32 %v1703_v39, %v837_v0  ;;  %v853_v43 = vmax.f32 %v845_v30, 0.0  ;;  %v854_v46 = vmax.f32 %v846_v23, 0.0 }
 0x2ea   :  { %v877_v3 = vmax.f32 %v869_v51, 0.0  ;;  %v878_v35 = vmax.f32 %v870_v37, 0.0  ;;  %v899_v54 = vmax.f32 %v891_v52, 0.0  ;;  %v900_v47 = vmax.f32 %v892_v44, 0.0 }
 0x2eb   :  { %v915_v7 = vadd.f32 %v1707_v42, %v837_v0  ;;  %v916_v32 = vadd.f32 %v1711_v2, %v837_v0  ;;  %v901_v12 = vmax.f32 %v893_v58, 0.0  ;;  %v902_v48 = vmax.f32 %v894_v29, 0.0 }
 0x2ec   :  { %v917_v60 = vadd.f32 %v909_v38, %v837_v0  ;;  %v918_v56 = vadd.f32 %v910_v11, %v837_v0  ;;  %v931_v41 = vmax.f32 %v851_v33, %v875_v22  ;;  %v932_v36 = vmax.f32 %v852_v19, %v876_v57 }
 0x2ed   :  { %v923_v9 = vmax.f32 %v915_v7, 0.0  ;;  %v924_v10 = vmax.f32 %v916_v32, 0.0  ;;  %v933_v61 = vmax.f32 %v853_v43, %v877_v3  ;;  %v934_v45 = vmax.f32 %v854_v46, %v878_v35 }
 0x2ee   :  { %v925_v21 = vmax.f32 %v917_v60, 0.0  ;;  %v926_v39 = vmax.f32 %v918_v56, 0.0 }
 0x2ef   :  { %v939_v53 = vmax.f32 %v899_v54, %v923_v9  ;;  %v940_v14 = vmax.f32 %v900_v47, %v924_v10 }
 0x2f0   :  { %v941_v49 = vmax.f32 %v901_v12, %v925_v21  ;;  %v942_v63 = vmax.f32 %v902_v48, %v926_v39 }
 0x2f1   :  { %v947_v26 = vmax.f32 %v931_v41, %v939_v53  ;;  %v948_v42 = vmax.f32 %v932_v36, %v940_v14 }
 0x2f2   :  { %v949_v17 = vmax.f32 %v933_v61, %v941_v49  ;;  %v950_v2 = vmax.f32 %v934_v45, %v942_v63 }
 0x2f3   :  { %v1056_v25 = vpack.c.bf16 %v948_v42, %v947_v26 }
 0x2f4   :  { %v1057_v5 = vpack.c.bf16 %v950_v2, %v949_v17 }
 0x2f5   :  { %979 = vst [vmem:[%s1774_s5 + $0x10] sm:$0xff] %v1056_v25 }
 0x2f6   :  { %980 = vst.msk [vmem:[%s1774_s5 + $0x18] sm:$0xff] %vm1737_vm5, %v1057_v5 }

// kernel: convnet_forward.4
= control target key start
LH: loop header
LB: loop body
LE: loop exit
PB: predicated region body
PF: predicated region fallthrough
CT: control target
= control target key end

     0   :  { %v2117_v0 = vmov 0   ;;  %vm291_vm0 = vcmask 130048   ;;  %vm1293_vm1 = vcmask 801792   ;;  %vm1599_vm2 = vcmask 797696   ;;  %s2818_s0 = inlined_call_operand.vmem [shape: bf16[4,400,98], index: 0, kind: input, shape index: {}]   ;;  %s2819_s1 = inlined_call_operand.vmem [shape: bf16[32,400], index: 1, kind: input, shape index: {}]   ;;  %s2820_s2 = inlined_call_operand.vmem [shape: f32[32,1], index: 2, kind: input, shape index: {}]   ;;  %s2821_s4 = inlined_call_operand.vmem [shape: f32[32,1], index: 4, kind: input, shape index: {}]   ;;  %s2822_s3 = inlined_call_operand.vmem [shape: f32[32,1], index: 3, kind: input, shape index: {}]   ;;  %s2823_s5 = inlined_call_operand.vmem [shape: bf16[32,98], index: 5, kind: output, shape index: {}]  }
   0x1   :  { %347 = vmatprep.subr.bf16.mxu1 %v2117_v0  ;;  %v1997_v1 = vld [vmem:[%s2818_s0 + $0x40] sm:$0xff]   ;;  %1995 = vset.pattern.permute.xlu0 %v2117_v0  ;;  %v2000_v4 = vld [vmem:[%s2818_s0 + $0x48] sm:$0xff]   ;;  %v2003_v7 = vld [vmem:[%s2818_s0 + $0x50] sm:$0xff]  }
   0x2   :  { %v1998_v2 = vld [vmem:[%s2818_s0 + $0x80] sm:$0xff]   ;;  %1996 = vset.pattern.permute.xlu1 %v2117_v0  ;;  %1882 = vmatprep.subr.bf16.mxu0 %v1997_v1  ;;  %v2001_v5 = vld [vmem:[%s2818_s0 + $0x88] sm:$0xff]   ;;  %v2004_v8 = vld [vmem:[%s2818_s0 + $0x90] sm:$0xff]  }
   0x3   :  { %v1999_v3 = vld [vmem:[%s2818_s0] sm:$0xff]   ;;  %348 = vmatpush1.bf16.msra.mxu1 %v1998_v2  ;;  %v2002_v6 = vld [vmem:[%s2818_s0 + $0x8] sm:$0xff]   ;;  %v2005_v9 = vld [vmem:[%s2818_s0 + $0x10] sm:$0xff]  }
   0x4   :  { %1883 = vmatpush3.bf16.msra.mxu0 %v1999_v3  ;;  %349 = vmatprep.subr.bf16.mxu1 %v2117_v0  ;;  %v2006_v10 = vld [vmem:[%s2818_s0 + $0x58] sm:$0xff]   ;;  %v2009_v13 = vld [vmem:[%s2818_s0 + $0x60] sm:$0xff]   ;;  %v2012_v16 = vld [vmem:[%s2818_s0 + $0x68] sm:$0xff]  }
   0x5   :  { %1884 = vmatprep.subr.bf16.mxu0 %v2000_v4  ;;  %v2007_v11 = vld [vmem:[%s2818_s0 + $0x98] sm:$0xff]   ;;  %v2010_v14 = vld [vmem:[%s2818_s0 + $0xa0] sm:$0xff]   ;;  %v2013_v17 = vld [vmem:[%s2818_s0 + $0xa8] sm:$0xff]  }
   0x6   :  { %v2008_v12 = vld [vmem:[%s2818_s0 + $0x18] sm:$0xff]   ;;  %v2011_v15 = vld [vmem:[%s2818_s0 + $0x20] sm:$0xff]   ;;  %v2014_v18 = vld [vmem:[%s2818_s0 + $0x28] sm:$0xff]  }
   0x7   :  { %350 = vmatpush1.bf16.msra.mxu1 %v2001_v5  ;;  %v2015_v19 = vld [vmem:[%s2818_s0 + $0x70] sm:$0xff]   ;;  %v2018_v23 = vld [vmem:[%s2818_s0 + $0x78] sm:$0xff]   ;;  %v2025_v26 = vld [vmem:[%s2818_s0 + $0x108] sm:$0xff]  }
   0x8   :  { %1885 = vmatpush3.bf16.msra.mxu0 %v2002_v6  ;;  %351 = vmatprep.subr.bf16.mxu1 %v2117_v0  ;;  %v2016_v20 = vld [vmem:[%s2818_s0 + $0xb0] sm:$0xff]   ;;  %v2019_v24 = vld [vmem:[%s2818_s0 + $0xb8] sm:$0xff]   ;;  %v2024_v29 = vld [vmem:[%s2818_s0 + $0xc0] sm:$0xff]  }
   0x9   :  { %1886 = vmatprep.subr.bf16.mxu0 %v2003_v7  ;;  %v2017_v21 = vld [vmem:[%s2818_s0 + $0x30] sm:$0xff]   ;;  %v2020_v25 = vld [vmem:[%s2818_s0 + $0x38] sm:$0xff]   ;;  %v2026_v30 = vld [vmem:[%s2818_s0 + $0xc8] sm:$0xff]  }
   0xa   :  { %v2223_v22 = vld [vmem:[%s2819_s1 + $0x4] ss:$16 sps:$4 sm:$0xff]   ;;  %v2242_v27 = vld [vmem:[%s2819_s1 + $0xc] ss:$16 sps:$4 sm:$0xff]   ;;  %v2247_v28 = vld [vmem:[%s2819_s1] ss:$16 sps:$4 sm:$0xff]  }
   0xb   :  { %352 = vmatpush1.bf16.msra.mxu1 %v2004_v8  ;;  %330 = vmatprep.mubr.bf16.mxu0 %v2223_v22  ;;  %v2030_v31 = vld [vmem:[%s2818_s0 + $0x110] sm:$0xff]   ;;  %v2264_v32 = vld [vmem:[%s2819_s1 + $0x8] ss:$16 sps:$4 sm:$0xff]   ;;  %v2036_v38 = vld [vmem:[%s2818_s0 + $0x120] sm:$0xff]  }
   0xc   :  { %1887 = vmatpush3.bf16.msra.mxu0 %v2005_v9  ;;  %353 = vmatprep.subr.bf16.mxu1 %v2117_v0  ;;  %v2031_v33 = vld [vmem:[%s2818_s0 + $0x148] sm:$0xff]   ;;  %v2032_v34 = vld [vmem:[%s2818_s0 + $0xd0] sm:$0xff]   ;;  %v2033_v35 = vld [vmem:[%s2818_s0 + $0x118] sm:$0xff]  }
   0xd   :  { %1888 = vmatprep.subr.bf16.mxu0 %v2006_v10  ;;  %1641 = vmatprep.mubr.msk.bf16.mxu1 %vm291_vm0, %v2242_v27  ;;  %v2034_v36 = vld [vmem:[%s2818_s0 + $0x150] sm:$0xff]   ;;  %v2035_v37 = vld [vmem:[%s2818_s0 + $0xd8] sm:$0xff]   ;;  %v2038_v40 = vld [vmem:[%s2818_s0 + $0xe0] sm:$0xff]  }
   0xe   :  { %v2037_v39 = vld [vmem:[%s2818_s0 + $0x158] sm:$0xff]   ;;  %v2039_v41 = vld [vmem:[%s2818_s0 + $0x128] sm:$0xff]   ;;  %v2301_v42 = vld [vmem:[%s2819_s1 + $0x24] ss:$16 sps:$4 sm:$0xff]  }
   0xf   :  { %354 = vmatpush1.bf16.msra.mxu1 %v2007_v11  ;;  %v2306_v43 = vld [vmem:[%s2819_s1 + $0x20] ss:$16 sps:$4 sm:$0xff]   ;;  %v2041_v45 = vld [vmem:[%s2818_s0 + $0xe8] sm:$0xff]   ;;  %v2048_v51 = vld [vmem:[%s2818_s0 + $0x138] sm:$0xff]  }
  0x10   :  { %1889 = vmatpush3.bf16.msra.mxu0 %v2008_v12  ;;  %355 = vmatprep.subr.bf16.mxu1 %v2117_v0  ;;  %v2040_v44 = vld [vmem:[%s2818_s0 + $0x160] sm:$0xff]   ;;  %v2042_v46 = vld [vmem:[%s2818_s0 + $0x130] sm:$0xff]   ;;  %v2323_v47 = vld [vmem:[%s2819_s1 + $0x2c] ss:$16 sps:$4 sm:$0xff]  }
  0x11   :  { %1890 = vmatprep.subr.bf16.mxu0 %v2009_v13  ;;  %v2328_v48 = vld [vmem:[%s2819_s1 + $0x28] ss:$16 sps:$4 sm:$0xff]   ;;  %v2044_v50 = vld [vmem:[%s2818_s0 + $0xf0] sm:$0xff]   ;;  %v2054_v54 = vld [vmem:[%s2818_s0 + $0x140] sm:$0xff]  }
  0x12   :  { %v2043_v49 = vld [vmem:[%s2818_s0 + $0x168] sm:$0xff]   ;;  %v2049_v52 = vld [vmem:[%s2818_s0 + $0x170] sm:$0xff]   ;;  %v2050_v53 = vld [vmem:[%s2818_s0 + $0xf8] sm:$0xff]  }
  0x13   :  { %356 = vmatpush1.bf16.msra.mxu1 %v2010_v14  ;;  %v2055_v55 = vld [vmem:[%s2818_s0 + $0x178] sm:$0xff]   ;;  %v2056_v56 = vld [vmem:[%s2818_s0 + $0x100] sm:$0xff]   ;;  %v2058_v57 = vld [vmem:[%s2818_s0 + $0x1d0] sm:$0xff]  }
  0x14   :  { %1891 = vmatpush3.bf16.msra.mxu0 %v2011_v15  ;;  %357 = vmatprep.subr.bf16.mxu1 %v2117_v0  ;;  %v2057_v58 = vld [vmem:[%s2818_s0 + $0x180] sm:$0xff]   ;;  %v2059_v59 = vld [vmem:[%s2818_s0 + $0x190] sm:$0xff]   ;;  %v2061_v60 = vld [vmem:[%s2818_s0 + $0x1d8] sm:$0xff]  }
  0x15   :  { %1892 = vmatprep.subr.bf16.mxu0 %v2012_v16  ;;  %v2060_v61 = vld [vmem:[%s2818_s0 + $0x188] sm:$0xff]   ;;  %v2062_v62 = vld [vmem:[%s2818_s0 + $0x198] sm:$0xff]   ;;  %v2063_v63 = vld [vmem:[%s2818_s0 + $0x1e0] sm:$0xff]  }
  0x16   :  { %v2064_v1 = vld [vmem:[%s2818_s0 + $0x210] sm:$0xff]   ;;  %v2065_v2 = vld [vmem:[%s2818_s0 + $0x1a0] sm:$0xff]   ;;  %v2066_v3 = vld [vmem:[%s2818_s0 + $0x1e8] sm:$0xff]  }
  0x17   :  { %358 = vmatpush1.bf16.msra.mxu1 %v2013_v17  ;;  %v2067_v4 = vld [vmem:[%s2818_s0 + $0x218] sm:$0xff]   ;;  %v2068_v5 = vld [vmem:[%s2818_s0 + $0x1a8] sm:$0xff]   ;;  %v2069_v6 = vld [vmem:[%s2818_s0 + $0x1f0] sm:$0xff]  }
  0x18   :  { %1893 = vmatpush3.bf16.msra.mxu0 %v2014_v18  ;;  %359 = vmatprep.subr.bf16.mxu1 %v2117_v0  ;;  %v2070_v7 = vld [vmem:[%s2818_s0 + $0x220] sm:$0xff]   ;;  %v2071_v8 = vld [vmem:[%s2818_s0 + $0x1b0] sm:$0xff]   ;;  %v2072_v9 = vld [vmem:[%s2818_s0 + $0x1f8] sm:$0xff]  }
  0x19   :  { %1894 = vmatprep.subr.bf16.mxu0 %v2015_v19  ;;  %v2073_v10 = vld [vmem:[%s2818_s0 + $0x228] sm:$0xff]   ;;  %v2074_v11 = vld [vmem:[%s2818_s0 + $0x1b8] sm:$0xff]   ;;  %v2075_v12 = vld [vmem:[%s2818_s0 + $0x200] sm:$0xff]  }
  0x1a   :  { %v2076_v13 = vld [vmem:[%s2818_s0 + $0x230] sm:$0xff]   ;;  %v2077_v14 = vld [vmem:[%s2818_s0 + $0x1c0] sm:$0xff]   ;;  %v2078_v15 = vld [vmem:[%s2818_s0 + $0x208] sm:$0xff]  }
  0x1b   :  { %360 = vmatpush1.bf16.msra.mxu1 %v2016_v20  ;;  %v2079_v16 = vld [vmem:[%s2818_s0 + $0x238] sm:$0xff]   ;;  %v2080_v17 = vld [vmem:[%s2818_s0 + $0x1c8] sm:$0xff]   ;;  %v29_v19 = vld [vmem:[%s2820_s2] sm:$0xff] }
  0x1c   :  { %1895 = vmatpush3.bf16.msra.mxu0 %v2017_v21  ;;  %361 = vmatprep.subr.bf16.mxu1 %v2117_v0  ;;  %v2082_v18 = vld [vmem:[%s2818_s0 + $0x298] sm:$0xff]   ;;  %v2081_v20 = vld [vmem:[%s2818_s0 + $0x240] sm:$0xff]  }
  0x1d   :  { %1896 = vmatprep.subr.bf16.mxu0 %v2018_v23  ;;  %85 = vperm.xlu0 %1995, %v29_v19   ;;  %v2083_v21 = vld [vmem:[%s2818_s0 + $0x258] sm:$0xff]   ;;  %v2085_v23 = vld [vmem:[%s2818_s0 + $0x2a0] sm:$0xff]  }
  0x1f   :  { %362 = vmatpush1.bf16.msra.mxu1 %v2019_v24  ;;  %v2084_v24 = vld [vmem:[%s2818_s0 + $0x248] sm:$0xff]  }
  0x20   :  { %1897 = vmatpush3.bf16.msra.mxu0 %v2020_v25  ;;  %363 = vmatprep.subr.bf16.mxu1 %v2117_v0  ;;  %v30_v25 = vld [vmem:[%s2820_s2 + $0x8] sm:$0xff] }
  0x21   :  { %1910 = vmatprep.subr.bf16.mxu0 %v2025_v26  ;;  %v2086_v26 = vld [vmem:[%s2818_s0 + $0x260] sm:$0xff]   ;;  %90 = vperm.xlu0 %1995, %v30_v25  }
  0x23   :  { %331 = vmatmul.mubr.bf16.vlgmr.msra.gmra.mrb[0].mxu0 %v2247_v28  ;;  %364 = vmatpush1.bf16.msra.mxu1 %v2024_v29  ;;  %v2088_v29 = vld [vmem:[%s2818_s0 + $0x2a8] sm:$0xff]  }
  0x24   :  { %1911 = vmatpush3.bf16.msra.mxu0 %v2026_v30  ;;  %646 = vmatprep.subr.bf16.mxu1 %v2117_v0  ;;  %v2087_v30 = vld [vmem:[%s2818_s0 + $0x250] sm:$0xff]  }
  0x25   :  { %1912 = vmatprep.subr.bf16.mxu0 %v2030_v31  ;;  %338 = vmatprep.mubr.bf16.mxu0 %v2301_v42  ;;  %v2089_v31 = vld [vmem:[%s2818_s0 + $0x268] sm:$0xff]  }
  0x26   :  { %380 = vmatmul.mubr.bf16.vlgmr.msra.gmra.mrb[0].mxu1 %v2264_v32 }
  0x27   :  { %647 = vmatpush1.bf16.msra.mxu1 %v2031_v33  ;;  %1642 = vmatprep.mubr.msk.bf16.mxu1 %vm291_vm0, %v2323_v47  ;;  %v2090_v33 = vld [vmem:[%s2818_s0 + $0x2b0] sm:$0xff]  }
  0x28   :  { %1913 = vmatpush3.bf16.msra.mxu0 %v2032_v34  ;;  %648 = vmatprep.subr.bf16.mxu1 %v2117_v0  ;;  %v2091_v34 = vld [vmem:[%s2818_s0 + $0x2d8] sm:$0xff]  }
  0x29   :  { %1914 = vmatprep.subr.bf16.mxu0 %v2033_v35  ;;  %v31_v35 = vld [vmem:[%s2820_s2 + $0x10] sm:$0xff] }
  0x2a   :  { %95 = vperm.xlu1 %1996, %v31_v35  }
  0x2b   :  { %649 = vmatpush1.bf16.msra.mxu1 %v2034_v36  ;;  %339 = vmatmul.mubr.bf16.gmra.mrb[4].mxu0 %v2306_v43  ;;  %v2092_v36 = vld [vmem:[%s2818_s0 + $0x270] sm:$0xff]  }
  0x2c   :  { %1915 = vmatpush3.bf16.msra.mxu0 %v2035_v37  ;;  %650 = vmatprep.subr.bf16.mxu1 %v2117_v0  ;;  %v2093_v37 = vld [vmem:[%s2818_s0 + $0x2b8] sm:$0xff]  }
  0x2d   :  { %1916 = vmatprep.subr.bf16.mxu0 %v2036_v38  ;;  %629 = vmatprep.mubr.bf16.mxu0 %v2223_v22  ;;  %v2094_v38 = vld [vmem:[%s2818_s0 + $0x2e0] sm:$0xff]  }
  0x2e   :  { %388 = vmatmul.mubr.bf16.gmra.mrb[4].mxu1 %v2328_v48 }
  0x2f   :  { %651 = vmatpush1.bf16.msra.mxu1 %v2037_v39  ;;  %1718 = vmatprep.mubr.msk.bf16.mxu1 %vm291_vm0, %v2242_v27  ;;  %v32_v39 = vld [vmem:[%s2820_s2 + $0x18] sm:$0xff] }
  0x30   :  { %1917 = vmatpush3.bf16.msra.mxu0 %v2038_v40  ;;  %652 = vmatprep.subr.bf16.mxu1 %v2117_v0  ;;  %v2096_v40 = vld [vmem:[%s2818_s0 + $0x2c0] sm:$0xff]  }
  0x31   :  { %1918 = vmatprep.subr.bf16.mxu0 %v2039_v41  ;;  %100 = vperm.xlu1 %1996, %v32_v39   ;;  %v2097_v41 = vld [vmem:[%s2818_s0 + $0x2e8] sm:$0xff]  }
  0x33   :  { %653 = vmatpush1.bf16.msra.mxu1 %v2040_v44  ;;  %v2098_v44 = vld [vmem:[%s2818_s0 + $0x280] sm:$0xff]  }
  0x34   :  { %1919 = vmatpush3.bf16.msra.mxu0 %v2041_v45  ;;  %654 = vmatprep.subr.bf16.mxu1 %v2117_v0  ;;  %v2099_v45 = vld [vmem:[%s2818_s0 + $0x2c8] sm:$0xff]  }
  0x35   :  { %1920 = vmatprep.subr.bf16.mxu0 %v2042_v46  ;;  %v2100_v46 = vld [vmem:[%s2818_s0 + $0x2f0] sm:$0xff]  }
  0x37   :  { %655 = vmatpush1.bf16.msra.mxu1 %v2043_v49  ;;  %v2101_v49 = vld [vmem:[%s2818_s0 + $0x288] sm:$0xff]  }
  0x38   :  { %1921 = vmatpush3.bf16.msra.mxu0 %v2044_v50  ;;  %656 = vmatprep.subr.bf16.mxu1 %v2117_v0  ;;  %v2102_v50 = vld [vmem:[%s2818_s0 + $0x2d0] sm:$0xff]  }
  0x39   :  { %1922 = vmatprep.subr.bf16.mxu0 %v2048_v51  ;;  %v2103_v51 = vld [vmem:[%s2818_s0 + $0x2f8] sm:$0xff]  }
  0x3b   :  { %657 = vmatpush1.bf16.msra.mxu1 %v2049_v52  ;;  %v2105_v52 = vld [vmem:[%s2818_s0 + $0x300] sm:$0xff]  }
  0x3c   :  { %1923 = vmatpush3.bf16.msra.mxu0 %v2050_v53  ;;  %658 = vmatprep.subr.bf16.mxu1 %v2117_v0  ;;  %v2106_v53 = vld [vmem:[%s2818_s0 + $0x308] sm:$0xff]  }
  0x3d   :  { %1924 = vmatprep.subr.bf16.mxu0 %v2054_v54  ;;  %v2107_v54 = vld [vmem:[%s2818_s0 + $0x310] sm:$0xff]  }
  0x3f   :  { %659 = vmatpush1.bf16.msra.mxu1 %v2055_v55 }
  0x40   :  { %1925 = vmatpush3.bf16.msra.mxu0 %v2056_v56  ;;  %660 = vmatprep.subr.bf16.mxu1 %v2117_v0 }
  0x41   :  { %1938 = vmatprep.subr.bf16.mxu0 %v2058_v57 }
  0x43   :  { %661 = vmatpush1.bf16.msra.mxu1 %v2057_v58  ;;  %630 = vmatmul.mubr.bf16.vlgmr.msra.gmra.mrb[8].mxu0 %v2247_v28 }
  0x44   :  { %1939 = vmatpush3.bf16.msra.mxu0 %v2059_v59  ;;  %662 = vmatprep.subr.bf16.mxu1 %v2117_v0 }
  0x45   :  { %1940 = vmatprep.subr.bf16.mxu0 %v2061_v60  ;;  %637 = vmatprep.mubr.bf16.mxu0 %v2301_v42 }
  0x47   :  { %663 = vmatpush1.bf16.msra.mxu1 %v2060_v61 }
  0x48   :  { %1941 = vmatpush3.bf16.msra.mxu0 %v2062_v62  ;;  %945 = vmatprep.subr.bf16.mxu1 %v2117_v0 }
  0x49   :  { %1942 = vmatprep.subr.bf16.mxu0 %v2063_v63 }
  0x4a   :  { %679 = vmatmul.mubr.bf16.vlgmr.msra.gmra.mrb[8].mxu1 %v2264_v32 }
  0x4b   :  { %946 = vmatpush1.bf16.msra.mxu1 %v2064_v1  ;;  %638 = vmatmul.mubr.bf16.gmra.mrb[12].mxu0 %v2306_v43 }
  0x4c   :  { %1943 = vmatpush3.bf16.msra.mxu0 %v2065_v2  ;;  %947 = vmatprep.subr.bf16.mxu1 %v2117_v0 }
  0x4d   :  { %1944 = vmatprep.subr.bf16.mxu0 %v2066_v3  ;;  %1719 = vmatprep.mubr.msk.bf16.mxu1 %vm291_vm0, %v2323_v47 }
  0x4e   :  { %928 = vmatprep.mubr.bf16.mxu0 %v2223_v22 }
  0x4f   :  { %948 = vmatpush1.bf16.msra.mxu1 %v2067_v4 }
  0x50   :  { %1945 = vmatpush3.bf16.msra.mxu0 %v2068_v5  ;;  %949 = vmatprep.subr.bf16.mxu1 %v2117_v0 }
  0x51   :  { %1946 = vmatprep.subr.bf16.mxu0 %v2069_v6 }
  0x52   :  { %687 = vmatmul.mubr.bf16.gmra.mrb[12].mxu1 %v2328_v48 }
  0x53   :  { %950 = vmatpush1.bf16.msra.mxu1 %v2070_v7  ;;  %1795 = vmatprep.mubr.msk.bf16.mxu1 %vm291_vm0, %v2242_v27 }
  0x54   :  { %1947 = vmatpush3.bf16.msra.mxu0 %v2071_v8  ;;  %951 = vmatprep.subr.bf16.mxu1 %v2117_v0 }
  0x55   :  { %1948 = vmatprep.subr.bf16.mxu0 %v2072_v9 }
  0x57   :  { %952 = vmatpush1.bf16.msra.mxu1 %v2073_v10 }
  0x58   :  { %1949 = vmatpush3.bf16.msra.mxu0 %v2074_v11  ;;  %953 = vmatprep.subr.bf16.mxu1 %v2117_v0 }
  0x59   :  { %1950 = vmatprep.subr.bf16.mxu0 %v2075_v12 }
  0x5b   :  { %954 = vmatpush1.bf16.msra.mxu1 %v2076_v13 }
  0x5c   :  { %1951 = vmatpush3.bf16.msra.mxu0 %v2077_v14  ;;  %955 = vmatprep.subr.bf16.mxu1 %v2117_v0 }
  0x5d   :  { %1952 = vmatprep.subr.bf16.mxu0 %v2078_v15 }
  0x5f   :  { %956 = vmatpush1.bf16.msra.mxu1 %v2079_v16 }
  0x60   :  { %1953 = vmatpush3.bf16.msra.mxu0 %v2080_v17  ;;  %957 = vmatprep.subr.bf16.mxu1 %v2117_v0 }
  0x61   :  { %1966 = vmatprep.subr.bf16.mxu0 %v2082_v18 }
  0x63   :  { %958 = vmatpush1.bf16.msra.mxu1 %v2081_v20  ;;  %929 = vmatmul.mubr.bf16.vlgmr.msra.gmra.mrb[16].mxu0 %v2247_v28 }
  0x64   :  { %1967 = vmatpush3.bf16.msra.mxu0 %v2083_v21  ;;  %959 = vmatprep.subr.bf16.mxu1 %v2117_v0 }
  0x65   :  { %1968 = vmatprep.subr.bf16.mxu0 %v2085_v23  ;;  %936 = vmatprep.mubr.bf16.mxu0 %v2301_v42 }
  0x67   :  { %960 = vmatpush1.bf16.msra.mxu1 %v2084_v24 }
  0x68   :  { %1969 = vmatpush3.bf16.msra.mxu0 %v2086_v26  ;;  %961 = vmatprep.subr.bf16.mxu1 %v2117_v0 }
  0x69   :  { %1970 = vmatprep.subr.bf16.mxu0 %v2088_v29 }
  0x6b   :  { %962 = vmatpush1.bf16.msra.mxu1 %v2087_v30  ;;  %937 = vmatmul.mubr.bf16.gmra.mrb[20].mxu0 %v2306_v43 }
  0x6c   :  { %1971 = vmatpush3.bf16.msra.mxu0 %v2089_v31  ;;  %1244 = vmatprep.subr.bf16.mxu1 %v2117_v0 }
  0x6d   :  { %1972 = vmatprep.subr.bf16.mxu0 %v2090_v33  ;;  %1227 = vmatprep.mubr.bf16.mxu0 %v2223_v22  ;;  %v2095_v22 = vld [vmem:[%s2818_s0 + $0x278] sm:$0xff]  }
  0x6e   :  { %978 = vmatmul.mubr.bf16.vlgmr.msra.gmra.mrb[16].mxu1 %v2264_v32 }
  0x6f   :  { %1245 = vmatpush1.bf16.msra.mxu1 %v2091_v34  ;;  %1796 = vmatprep.mubr.msk.bf16.mxu1 %vm291_vm0, %v2323_v47 }
  0x70   :  { %1973 = vmatpush3.bf16.msra.mxu0 %v2092_v36  ;;  %1246 = vmatprep.subr.bf16.mxu1 %v2117_v0 }
  0x71   :  { %1974 = vmatprep.subr.bf16.mxu0 %v2093_v37 }
  0x73   :  { %1247 = vmatpush1.bf16.msra.mxu1 %v2094_v38 }
  0x74   :  { %1975 = vmatpush3.bf16.msra.mxu0 %v2095_v22  ;;  %1248 = vmatprep.subr.bf16.mxu1 %v2117_v0 }
  0x75   :  { %1976 = vmatprep.subr.bf16.mxu0 %v2096_v40 }
  0x76   :  { %986 = vmatmul.mubr.bf16.gmra.mrb[20].mxu1 %v2328_v48 }
  0x77   :  { %1249 = vmatpush1.bf16.msra.mxu1 %v2097_v41  ;;  %1872 = vmatprep.mubr.msk.bf16.mxu1 %vm291_vm0, %v2242_v27  ;;  %v2104_v27 = vld [vmem:[%s2818_s0 + $0x290] sm:$0xff]  }
  0x78   :  { %1977 = vmatpush3.bf16.msra.mxu0 %v2098_v44  ;;  %1250 = vmatprep.subr.bf16.mxu1 %v2117_v0 }
  0x79   :  { %1978 = vmatprep.subr.bf16.mxu0 %v2099_v45 }
  0x7b   :  { %1251 = vmatpush1.bf16.msra.mxu1 %v2100_v46 }
  0x7c   :  { %1979 = vmatpush3.bf16.msra.mxu0 %v2101_v49  ;;  %1252 = vmatprep.subr.bf16.mxu1 %v2117_v0 }
  0x7d   :  { %1980 = vmatprep.subr.bf16.mxu0 %v2102_v50 }
  0x7f   :  { %1253 = vmatpush1.bf16.msra.mxu1 %v2103_v51 }
  0x80   :  { %1981 = vmatpush3.bf16.msra.mxu0 %v2104_v27  ;;  %1254 = vmatprep.subr.bf16.mxu1 %v2117_v0 }
  0x83   :  { %1228 = vmatmul.mubr.bf16.vlgmr.msra.gmra.mrb[24].mxu0 %v2247_v28  ;;  %1255 = vmatpush1.bf16.msra.mxu1 %v2105_v52  ;;  %v2108_v28 = vld [vmem:[%s2818_s0 + $0x318] sm:$0xff]  }
  0x84   :  { %1256 = vmatprep.subr.bf16.mxu1 %v2117_v0  ;;  %1235 = vmatprep.mubr.bf16.mxu0 %v2301_v42 }
  0x87   :  { %1257 = vmatpush1.bf16.msra.mxu1 %v2106_v53 }
  0x88   :  { %1258 = vmatprep.subr.bf16.mxu1 %v2117_v0 }
  0x8b   :  { %1236 = vmatmul.mubr.bf16.gmra.mrb[28].mxu0 %v2306_v43  ;;  %1259 = vmatpush1.bf16.msra.mxu1 %v2107_v54 }
  0x8c   :  { %1260 = vmatprep.subr.bf16.mxu1 %v2117_v0 }
  0x8f   :  { %1261 = vmatpush1.bf16.msra.mxu1 %v2108_v28 }
  0x92   :  { %1277 = vmatmul.mubr.bf16.vlgmr.msra.gmra.mrb[24].mxu1 %v2264_v32 }
  0x93   :  { %1873 = vmatprep.mubr.msk.bf16.mxu1 %vm291_vm0, %v2323_v47 }
  0x9a   :  { %1285 = vmatmul.mubr.bf16.gmra.mrb[28].mxu1 %v2328_v48 }
  0x9c   :  { %v2578_v42 = vpop.permute.xlu0 %85 }
  0xa0   :  { %v2580_v58 = vpop.permute.xlu0 %90 }
  0xa9   :  { %v2592_v4 = vpop.permute.xlu1 %95 }
  0xb0   :  { %v2594_v10 = vpop.permute.xlu1 %100 }
  0xf6   :  { %v1898_v55 = vpop.f32.mrb[0].mxu0 }
  0xf7   :  { %v1899_v56 = vpop.f32.mrb[1].mxu0 }
  0xf8   :  { %v1900_v43 = vadd.f32 %v1899_v56, %v1898_v55  ;;  %v1901_v57 = vpop.f32.mrb[2].mxu0 }
  0xf9   :  { %v1902_v59 = vpop.f32.mrb[3].mxu0  ;;  %v381_v60 = vpop.f32.mrb[0].mxu1 }
  0xfa   :  { %v1903_v61 = vadd.f32 %v1902_v59, %v1901_v57  ;;  %v333_v0 = vadd.f32 %v1900_v43, %v2578_v42  ;;  %v383_v62 = vpop.f32.mrb[1].mxu1 }
  0xfb   :  { %v384_v32 = vpop.f32.mrb[2].mxu1 }
  0xfc   :  { %v2583_v63 = vadd.f32 %v381_v60, %v333_v0  ;;  %v336_v47 = vadd.f32 %v1903_v61, %v2580_v58  ;;  %v386_v48 = vpop.f32.mrb[3].mxu1 }
  0xfe   :  { %v2586_v1 = vadd.f32 %v384_v32, %v336_v47  ;;  %v1294_v2 = vsel %vm1293_vm1, %v2583_v63, 0.0  ;;  %v1904_v5 = vpop.f32.mrb[4].mxu0 }
  0xff   :  { %1295 = vadd.xlane.f32.xlu0 %v1294_v2  ;;  %v1905_v6 = vpop.f32.mrb[5].mxu0 }
 0x100   :  { %v1297_v3 = vsel %vm1293_vm1, %v2586_v1, 0.0  ;;  %v1906_v7 = vadd.f32 %v1905_v6, %v1904_v5  ;;  %v1907_v8 = vpop.f32.mrb[6].mxu0 }
 0x101   :  { %1298 = vadd.xlane.f32.xlu1 %v1297_v3  ;;  %v1908_v9 = vpop.f32.mrb[7].mxu0  ;;  %v389_v13 = vpop.f32.mrb[4].mxu1 }
 0x102   :  { %v1909_v11 = vadd.f32 %v1908_v9, %v1907_v8  ;;  %v341_v12 = vadd.f32 %v1906_v7, %v2592_v4  ;;  %v391_v14 = vpop.f32.mrb[5].mxu1 }
 0x103   :  { %v392_v17 = vpop.f32.mrb[6].mxu1 }
 0x104   :  { %v2597_v15 = vadd.f32 %v389_v13, %v341_v12  ;;  %v344_v16 = vadd.f32 %v1909_v11, %v2594_v10  ;;  %v394_v18 = vpop.f32.mrb[7].mxu1 }
 0x106   :  { %v2600_v19 = vadd.f32 %v392_v17, %v344_v16  ;;  %v1300_v20 = vsel %vm1293_vm1, %v2597_v15, 0.0 }
 0x107   :  { %1301 = vadd.xlane.f32.xlu0 %v1300_v20 }
 0x108   :  { %v1303_v21 = vsel %vm1293_vm1, %v2600_v19, 0.0 }
 0x10b   :  { %1304 = vadd.xlane.f32.xlu0 %v1303_v21 }
 0x116   :  { %v1926_v23 = vpop.f32.mrb[8].mxu0 }
 0x117   :  { %v1927_v24 = vpop.f32.mrb[9].mxu0 }
 0x118   :  { %v1928_v25 = vadd.f32 %v1927_v24, %v1926_v23  ;;  %v1929_v26 = vpop.f32.mrb[10].mxu0 }
 0x119   :  { %v1930_v29 = vpop.f32.mrb[11].mxu0 }
 0x11a   :  { %v1931_v30 = vadd.f32 %v1930_v29, %v1929_v26  ;;  %v632_v31 = vadd.f32 %v1928_v25, %v2578_v42 }
 0x11c   :  { %v635_v33 = vadd.f32 %v1931_v30, %v2580_v58 }
 0x11d   :  { %v680_v34 = vpop.f32.mrb[8].mxu1 }
 0x11e   :  { %v2608_v35 = vadd.f32 %v680_v34, %v632_v31  ;;  %v682_v36 = vpop.f32.mrb[9].mxu1  ;;  %v1932_v37 = vpop.f32.mrb[12].mxu0 }
 0x11f   :  { %v683_v38 = vpop.f32.mrb[10].mxu1  ;;  %v1933_v39 = vpop.f32.mrb[13].mxu0 }
 0x120   :  { %v2610_v22 = vadd.f32 %v683_v38, %v635_v33  ;;  %v685_v40 = vpop.f32.mrb[11].mxu1  ;;  %v1934_v41 = vadd.f32 %v1933_v39, %v1932_v37  ;;  %v1310_v44 = vsel %vm1293_vm1, %v2608_v35, 0.0  ;;  %v1935_v45 = vpop.f32.mrb[14].mxu0 }
 0x121   :  { %1311 = vadd.xlane.f32.xlu1 %v1310_v44  ;;  %v1936_v46 = vpop.f32.mrb[15].mxu0 }
 0x122   :  { %v1937_v49 = vadd.f32 %v1936_v46, %v1935_v45  ;;  %v1313_v50 = vsel %vm1293_vm1, %v2610_v22, 0.0  ;;  %v640_v51 = vadd.f32 %v1934_v41, %v2592_v4 }
 0x123   :  { %1314 = vadd.xlane.f32.xlu0 %v1313_v50 }
 0x124   :  { %v643_v27 = vadd.f32 %v1937_v49, %v2594_v10 }
 0x125   :  { %v688_v52 = vpop.f32.mrb[12].mxu1 }
 0x126   :  { %v2618_v53 = vadd.f32 %v688_v52, %v640_v51  ;;  %v690_v54 = vpop.f32.mrb[13].mxu1 }
 0x127   :  { %v691_v28 = vpop.f32.mrb[14].mxu1 }
 0x128   :  { %v2620_v55 = vadd.f32 %v691_v28, %v643_v27  ;;  %v1316_v56 = vsel %vm1293_vm1, %v2618_v53, 0.0  ;;  %v693_v43 = vpop.f32.mrb[15].mxu1 }
 0x129   :  { %1317 = vadd.xlane.f32.xlu1 %v1316_v56 }
 0x12a   :  { %v1319_v57 = vsel %vm1293_vm1, %v2620_v55, 0.0 }
 0x12b   :  { %1320 = vadd.xlane.f32.xlu0 %v1319_v57 }
 0x136   :  { %v1954_v59 = vpop.f32.mrb[16].mxu0 }
 0x137   :  { %v1955_v60 = vpop.f32.mrb[17].mxu0 }
 0x138   :  { %v1956_v61 = vadd.f32 %v1955_v60, %v1954_v59  ;;  %v1957_v0 = vpop.f32.mrb[18].mxu0 }
 0x139   :  { %v1958_v62 = vpop.f32.mrb[19].mxu0 }
 0x13a   :  { %v1959_v32 = vadd.f32 %v1958_v62, %v1957_v0  ;;  %v931_v47 = vadd.f32 %v1956_v61, %v2578_v42 }
 0x13c   :  { %v934_v3 = vadd.f32 %v1959_v32, %v2580_v58 }
 0x13e   :  { %v1960_v48 = vpop.f32.mrb[20].mxu0 }
 0x13f   :  { %v1961_v2 = vpop.f32.mrb[21].mxu0 }
 0x140   :  { %v1962_v5 = vadd.f32 %v1961_v2, %v1960_v48  ;;  %v1963_v6 = vpop.f32.mrb[22].mxu0 }
 0x141   :  { %v979_v7 = vpop.f32.mrb[16].mxu1  ;;  %v1964_v8 = vpop.f32.mrb[23].mxu0 }
 0x142   :  { %v2628_v9 = vadd.f32 %v979_v7, %v931_v47  ;;  %v981_v11 = vpop.f32.mrb[17].mxu1  ;;  %v1965_v12 = vadd.f32 %v1964_v8, %v1963_v6  ;;  %v939_v20 = vadd.f32 %v1962_v5, %v2592_v4 }
 0x143   :  { %v982_v13 = vpop.f32.mrb[18].mxu1 }
 0x144   :  { %v2630_v14 = vadd.f32 %v982_v13, %v934_v3  ;;  %v984_v16 = vpop.f32.mrb[19].mxu1  ;;  %v1326_v17 = vsel %vm1293_vm1, %v2628_v9, 0.0  ;;  %v942_v21 = vadd.f32 %v1965_v12, %v2594_v10 }
 0x145   :  { %1327 = vadd.xlane.f32.xlu1 %v1326_v17 }
 0x146   :  { %v1329_v18 = vsel %vm1293_vm1, %v2630_v14, 0.0 }
 0x147   :  { %1330 = vadd.xlane.f32.xlu0 %v1329_v18 }
 0x149   :  { %v987_v23 = vpop.f32.mrb[20].mxu1 }
 0x14a   :  { %v2638_v24 = vadd.f32 %v987_v23, %v939_v20  ;;  %v989_v25 = vpop.f32.mrb[21].mxu1 }
 0x14b   :  { %v990_v26 = vpop.f32.mrb[22].mxu1 }
 0x14c   :  { %v2640_v29 = vadd.f32 %v990_v26, %v942_v21  ;;  %v1332_v30 = vsel %vm1293_vm1, %v2638_v24, 0.0  ;;  %v992_v31 = vpop.f32.mrb[23].mxu1 }
 0x14d   :  { %1333 = vadd.xlane.f32.xlu1 %v1332_v30 }
 0x14e   :  { %v1335_v33 = vsel %vm1293_vm1, %v2640_v29, 0.0 }
 0x14f   :  { %1336 = vadd.xlane.f32.xlu0 %v1335_v33 }
 0x156   :  { %v1982_v34 = vpop.f32.mrb[24].mxu0 }
 0x157   :  { %v1983_v36 = vpop.f32.mrb[25].mxu0 }
 0x158   :  { %v1984_v37 = vadd.f32 %v1983_v36, %v1982_v34  ;;  %v1985_v38 = vpop.f32.mrb[26].mxu0 }
 0x159   :  { %v1986_v39 = vpop.f32.mrb[27].mxu0 }
 0x15a   :  { %v1987_v40 = vadd.f32 %v1986_v39, %v1985_v38  ;;  %v1230_v51 = vadd.f32 %v1984_v37, %v2578_v42 }
 0x15c   :  { %v1233_v28 = vadd.f32 %v1987_v40, %v2580_v58 }
 0x15e   :  { %v1988_v41 = vpop.f32.mrb[28].mxu0 }
 0x15f   :  { %v1989_v44 = vpop.f32.mrb[29].mxu0 }
 0x160   :  { %v1990_v45 = vadd.f32 %v1989_v44, %v1988_v41  ;;  %v1991_v46 = vpop.f32.mrb[30].mxu0 }
 0x161   :  { %v1992_v49 = vpop.f32.mrb[31].mxu0 }
 0x162   :  { %v1993_v50 = vadd.f32 %v1992_v49, %v1991_v46  ;;  %v1238_v42 = vadd.f32 %v1990_v45, %v2592_v4 }
 0x164   :  { %v1241_v58 = vadd.f32 %v1993_v50, %v2594_v10 }
 0x165   :  { %v1278_v27 = vpop.f32.mrb[24].mxu1 }
 0x166   :  { %v2647_v52 = vadd.f32 %v1278_v27, %v1230_v51  ;;  %v1280_v54 = vpop.f32.mrb[25].mxu1 }
 0x167   :  { %v1281_v56 = vpop.f32.mrb[26].mxu1 }
 0x168   :  { %v2650_v43 = vadd.f32 %v1281_v56, %v1233_v28  ;;  %v1283_v57 = vpop.f32.mrb[27].mxu1  ;;  %v1342_v59 = vsel %vm1293_vm1, %v2647_v52, 0.0 }
 0x169   :  { %1343 = vadd.xlane.f32.xlu1 %v1342_v59 }
 0x16a   :  { %v1345_v60 = vsel %vm1293_vm1, %v2650_v43, 0.0 }
 0x16b   :  { %1346 = vadd.xlane.f32.xlu0 %v1345_v60 }
 0x16d   :  { %v1286_v61 = vpop.f32.mrb[28].mxu1 }
 0x16e   :  { %v2657_v0 = vadd.f32 %v1286_v61, %v1238_v42  ;;  %v1288_v62 = vpop.f32.mrb[29].mxu1 }
 0x16f   :  { %v1289_v32 = vpop.f32.mrb[30].mxu1 }
 0x170   :  { %v2660_v47 = vadd.f32 %v1289_v32, %v1241_v58  ;;  %v1348_v48 = vsel %vm1293_vm1, %v2657_v0, 0.0  ;;  %v1291_v2 = vpop.f32.mrb[31].mxu1 }
 0x171   :  { %1349 = vadd.xlane.f32.xlu1 %v1348_v48 }
 0x172   :  { %v1351_v3 = vsel %vm1293_vm1, %v2660_v47, 0.0 }
 0x173   :  { %1352 = vadd.xlane.f32.xlu0 %v1351_v3 }
 0x18c   :  { %v1296_v5 = vpop.xlane.xlu0 %1295 }
 0x18e   :  { %v1299_v6 = vpop.xlane.xlu1 %1298 }
 0x194   :  { %v1302_v4 = vpop.xlane.xlu0 %1301 }
 0x198   :  { %v1305_v7 = vpop.xlane.xlu0 %1304 }
 0x1ae   :  { %v1312_v8 = vpop.xlane.xlu1 %1311 }
 0x1af   :  { %v1322_v18 = vadd.f32 %v1312_v8, %v1296_v5 }
 0x1b0   :  { %v1315_v11 = vpop.xlane.xlu0 %1314 }
 0x1b1   :  { %v1323_v21 = vadd.f32 %v1315_v11, %v1299_v6 }
 0x1b6   :  { %v1318_v12 = vpop.xlane.xlu1 %1317 }
 0x1b7   :  { %v1324_v36 = vadd.f32 %v1318_v12, %v1302_v4 }
 0x1b8   :  { %v1321_v10 = vpop.xlane.xlu0 %1320 }
 0x1b9   :  { %v1325_v40 = vadd.f32 %v1321_v10, %v1305_v7 }
 0x1d2   :  { %v1328_v13 = vpop.xlane.xlu1 %1327 }
 0x1d3   :  { %v1338_v23 = vadd.f32 %v1328_v13, %v1322_v18 }
 0x1d4   :  { %v1331_v16 = vpop.xlane.xlu0 %1330 }
 0x1d5   :  { %v1339_v26 = vadd.f32 %v1331_v16, %v1323_v21 }
 0x1da   :  { %v1334_v17 = vpop.xlane.xlu1 %1333 }
 0x1db   :  { %v1340_v41 = vadd.f32 %v1334_v17, %v1324_v36 }
 0x1dc   :  { %v1337_v20 = vpop.xlane.xlu0 %1336 }
 0x1dd   :  { %v1341_v49 = vadd.f32 %v1337_v20, %v1325_v40 }
 0x1f6   :  { %v1344_v25 = vpop.xlane.xlu1 %1343 }
 0x1f7   :  { %v1354_v30 = vadd.f32 %v1344_v25, %v1338_v23 }
 0x1f8   :  { %v1347_v31 = vpop.xlane.xlu0 %1346 }
 0x1f9   :  { %v1359_v33 = vmul.f32 0.0025510204, %v1354_v30  ;;  %v1355_v34 = vadd.f32 %v1347_v31, %v1339_v26  ;;  %v1479_v30 = vld [vmem:[%s2821_s4] sm:$0xff] }
 0x1fb   :  { %v1360_v37 = vmul.f32 0.0025510204, %v1355_v34  ;;  %v2667_v38 = vsub.f32 %v2583_v63, %v1359_v33  ;;  %v2670_v39 = vsub.f32 %v2608_v35, %v1359_v33  ;;  %v2681_v51 = vsub.f32 %v2628_v9, %v1359_v33 }
 0x1fc   :  { %v2698_v42 = vsub.f32 %v2647_v52, %v1359_v33 }
 0x1fd   :  { %v1379_v44 = vmul.f32 %v2667_v38, %v2667_v38  ;;  %v2675_v45 = vsub.f32 %v2586_v1, %v1360_v37  ;;  %v2678_v46 = vsub.f32 %v2610_v22, %v1360_v37  ;;  %v1399_v54 = vmul.f32 %v2670_v39, %v2670_v39 }
 0x1fe   :  { %v1350_v50 = vpop.xlane.xlu1 %1349  ;;  %v2692_v9 = vsub.f32 %v2630_v14, %v1360_v37  ;;  %v1419_v60 = vmul.f32 %v2681_v51, %v2681_v51  ;;  %v2704_v14 = vsub.f32 %v2650_v43, %v1360_v37  ;;  %v1439_v48 = vmul.f32 %v2698_v42, %v2698_v42 }
 0x1ff   :  { %v1356_v63 = vadd.f32 %v1350_v50, %v1340_v41  ;;  %v1383_v35 = vsel %vm1293_vm1, %v1379_v44, 0.0  ;;  %v1380_v27 = vmul.f32 %v2675_v45, %v2675_v45  ;;  %v1400_v56 = vmul.f32 %v2678_v46, %v2678_v46 }
 0x200   :  { %1384 = vadd.xlane.f32.xlu1 %v1383_v35  ;;  %v1353_v1 = vpop.xlane.xlu0 %1352  ;;  %v1403_v59 = vsel %vm1293_vm1, %v1399_v54, 0.0  ;;  %v1420_v58 = vmul.f32 %v2692_v9, %v2692_v9  ;;  %v1423_v32 = vsel %vm1293_vm1, %v1419_v60, 0.0  ;;  %v1440_v3 = vmul.f32 %v2704_v14, %v2704_v14 }
 0x201   :  { %v1357_v28 = vadd.f32 %v1353_v1, %v1341_v49  ;;  %v1386_v22 = vsel %vm1293_vm1, %v1380_v27, 0.0  ;;  %v1361_v57 = vmul.f32 0.0025510204, %v1356_v63  ;;  %v1406_v62 = vsel %vm1293_vm1, %v1400_v56, 0.0 }
 0x202   :  { %1387 = vadd.xlane.f32.xlu0 %v1386_v22  ;;  %v1426_v52 = vsel %vm1293_vm1, %v1420_v58, 0.0  ;;  %v1443_v43 = vsel %vm1293_vm1, %v1439_v48, 0.0 }
 0x203   :  { %v1362_v61 = vmul.f32 0.0025510204, %v1357_v28  ;;  %v2710_v2 = vsub.f32 %v2597_v15, %v1361_v57  ;;  %v2722_v6 = vsub.f32 %v2618_v53, %v1361_v57  ;;  %v1446_v15 = vsel %vm1293_vm1, %v1440_v3, 0.0  ;;  %v1471_v3 = vld [vmem:[%s2822_s3] sm:$0xff] }
 0x204   :  { %1404 = vadd.xlane.f32.xlu1 %v1403_v59  ;;  %v2734_v12 = vsub.f32 %v2638_v24, %v1361_v57  ;;  %v2746_v17 = vsub.f32 %v2657_v0, %v1361_v57 }
 0x205   :  { %v2716_v5 = vsub.f32 %v2600_v19, %v1362_v61  ;;  %v1381_v4 = vmul.f32 %v2710_v2, %v2710_v2  ;;  %v2728_v8 = vsub.f32 %v2620_v55, %v1362_v61  ;;  %v1401_v11 = vmul.f32 %v2722_v6, %v2722_v6 }
 0x206   :  { %1407 = vadd.xlane.f32.xlu0 %v1406_v62  ;;  %v2740_v13 = vsub.f32 %v2640_v29, %v1362_v61  ;;  %v1421_v16 = vmul.f32 %v2734_v12, %v2734_v12  ;;  %v2752_v20 = vsub.f32 %v2660_v47, %v1362_v61  ;;  %v1441_v21 = vmul.f32 %v2746_v17, %v2746_v17  ;;  %v1480_v47 = vld [vmem:[%s2821_s4 + $0x8] sm:$0xff] }
 0x207   :  { %v1382_v7 = vmul.f32 %v2716_v5, %v2716_v5  ;;  %v1389_v19 = vsel %vm1293_vm1, %v1381_v4, 0.0  ;;  %v1402_v10 = vmul.f32 %v2728_v8, %v2728_v8  ;;  %v1409_v55 = vsel %vm1293_vm1, %v1401_v11, 0.0 }
 0x208   :  { %1424 = vadd.xlane.f32.xlu1 %v1423_v32  ;;  %v1422_v18 = vmul.f32 %v2740_v13, %v2740_v13  ;;  %v1429_v29 = vsel %vm1293_vm1, %v1421_v16, 0.0  ;;  %v1442_v0 = vmul.f32 %v2752_v20, %v2752_v20  ;;  %v1449_v25 = vsel %vm1293_vm1, %v1441_v21, 0.0 }
 0x209   :  { %v1392_v53 = vsel %vm1293_vm1, %v1382_v7, 0.0  ;;  %v1412_v24 = vsel %vm1293_vm1, %v1402_v10, 0.0 }
 0x20a   :  { %1427 = vadd.xlane.f32.xlu0 %v1426_v52  ;;  %v1432_v23 = vsel %vm1293_vm1, %v1422_v18, 0.0  ;;  %v1452_v26 = vsel %vm1293_vm1, %v1442_v0, 0.0  ;;  %v1473_v0 = vld [vmem:[%s2822_s3 + $0x10] sm:$0xff] }
 0x20c   :  { %1444 = vadd.xlane.f32.xlu1 %v1443_v43 }
 0x20e   :  { %1447 = vadd.xlane.f32.xlu0 %v1446_v15 }
 0x210   :  { %1390 = vadd.xlane.f32.xlu1 %v1389_v19  ;;  %v1472_v19 = vld [vmem:[%s2822_s3 + $0x8] sm:$0xff] }
 0x212   :  { %1393 = vadd.xlane.f32.xlu0 %v1392_v53 }
 0x214   :  { %1410 = vadd.xlane.f32.xlu1 %v1409_v55 }
 0x216   :  { %1413 = vadd.xlane.f32.xlu0 %v1412_v24 }
 0x218   :  { %1430 = vadd.xlane.f32.xlu1 %v1429_v29 }
 0x21a   :  { %1433 = vadd.xlane.f32.xlu0 %v1432_v23  ;;  %v1481_v23 = vld [vmem:[%s2821_s4 + $0x10] sm:$0xff] }
 0x21c   :  { %1450 = vadd.xlane.f32.xlu1 %v1449_v25 }
 0x21e   :  { %1453 = vadd.xlane.f32.xlu0 %v1452_v26 }
 0x22d   :  { %1514 = vperm.xlu1 %1996, %v1480_v47  }
 0x234   :  { %1509 = vperm.xlu0 %1995, %v1479_v30   ;;  %v1474_v30 = vld [vmem:[%s2822_s3 + $0x18] sm:$0xff] }
 0x28d   :  { %v1385_v31 = vpop.xlane.xlu1 %1384 }
 0x28f   :  { %v1388_v33 = vpop.xlane.xlu0 %1387 }
 0x291   :  { %v1405_v34 = vpop.xlane.xlu1 %1404 }
 0x292   :  { %v1415_v40 = vadd.f32 %v1405_v34, %v1385_v31 }
 0x293   :  { %v1408_v36 = vpop.xlane.xlu0 %1407 }
 0x294   :  { %v1416_v44 = vadd.f32 %v1408_v36, %v1388_v33  ;;  %v1482_v33 = vld [vmem:[%s2821_s4 + $0x18] sm:$0xff] }
 0x295   :  { %v1425_v37 = vpop.xlane.xlu1 %1424 }
 0x296   :  { %v1435_v49 = vadd.f32 %v1425_v37, %v1415_v40 }
 0x297   :  { %v1428_v41 = vpop.xlane.xlu0 %1427 }
 0x298   :  { %v1436_v63 = vadd.f32 %v1428_v41, %v1416_v44 }
 0x299   :  { %v1445_v50 = vpop.xlane.xlu1 %1444 }
 0x29a   :  { %v1455_v35 = vadd.f32 %v1445_v50, %v1435_v49 }
 0x29b   :  { %v1448_v27 = vpop.xlane.xlu0 %1447 }
 0x29c   :  { %v1459_v54 = vmul.f32 0.0025510204, %v1455_v35  ;;  %v1456_v1 = vadd.f32 %v1448_v27, %v1436_v63 }
 0x29d   :  { %v1391_v28 = vpop.xlane.xlu1 %1390 }
 0x29e   :  { %v1463_v22 = vadd.f32 1e-05, %v1459_v54  ;;  %v1460_v56 = vmul.f32 0.0025510204, %v1456_v1 }
 0x29f   :  { %v1394_v57 = vpop.xlane.xlu0 %1393 }
 0x2a0   :  { %2109 = vrsqrt.f32 %v1463_v22  ;;  %v1464_v59 = vadd.f32 1e-05, %v1460_v56 }
 0x2a1   :  { %v1411_v60 = vpop.xlane.xlu1 %1410 }
 0x2a2   :  { %2111 = vrsqrt.f32 %v1464_v59  ;;  %v1417_v58 = vadd.f32 %v1411_v60, %v1391_v28 }
 0x2a3   :  { %v1414_v61 = vpop.xlane.xlu0 %1413 }
 0x2a4   :  { %v1418_v48 = vadd.f32 %v1414_v61, %v1394_v57 }
 0x2a5   :  { %v1431_v62 = vpop.xlane.xlu1 %1430 }
 0x2a6   :  { %v1437_v52 = vadd.f32 %v1431_v62, %v1417_v58 }
 0x2a7   :  { %v1434_v32 = vpop.xlane.xlu0 %1433 }
 0x2a8   :  { %v1438_v15 = vadd.f32 %v1434_v32, %v1418_v48 }
 0x2a9   :  { %v1451_v43 = vpop.xlane.xlu1 %1450 }
 0x2aa   :  { %v2110_v4 = vpop.eup %2109  ;;  %v1457_v7 = vadd.f32 %v1451_v43, %v1437_v52 }
 0x2ab   :  { %v1454_v11 = vpop.xlane.xlu0 %1453  ;;  %v1475_v53 = vmul.f32 %v2110_v4, %v1471_v3 }
 0x2ac   :  { %v2112_v10 = vpop.eup %2111  ;;  %v1461_v55 = vmul.f32 0.0025510204, %v1457_v7  ;;  %v1458_v16 = vadd.f32 %v1454_v11, %v1438_v15 }
 0x2ad   :  { %1485 = vperm.xlu1 %1996, %v1475_v53   ;;  %v1476_v24 = vmul.f32 %v2112_v10, %v1472_v19  ;;  %v1515_v34 = vpop.permute.xlu1 %1514 }
 0x2ae   :  { %v1465_v18 = vadd.f32 1e-05, %v1461_v55  ;;  %v1462_v29 = vmul.f32 0.0025510204, %v1458_v16 }
 0x2af   :  { %1490 = vperm.xlu0 %1995, %v1476_v24  }
 0x2b0   :  { %2113 = vrsqrt.f32 %v1465_v18  ;;  %v1466_v21 = vadd.f32 1e-05, %v1462_v29 }
 0x2b2   :  { %2115 = vrsqrt.f32 %v1466_v21 }
 0x2b3   :  { %1519 = vperm.xlu0 %1995, %v1481_v23   ;;  %v1510_v36 = vpop.permute.xlu0 %1509 }
 0x2ba   :  { %v2114_v25 = vpop.eup %2113 }
 0x2bb   :  { %v1477_v26 = vmul.f32 %v2114_v25, %v1473_v0 }
 0x2bc   :  { %v2116_v47 = vpop.eup %2115 }
 0x2bd   :  { %1495 = vperm.xlu1 %1996, %v1477_v26   ;;  %v1478_v31 = vmul.f32 %v2116_v47, %v1474_v30 }
 0x2c1   :  { %1500 = vperm.xlu1 %1996, %v1478_v31  }
 0x2c5   :  { %1524 = vperm.xlu1 %1996, %v1482_v33  }
 0x32c   :  { %v1486_v37 = vpop.permute.xlu1 %1485 }
 0x32d   :  { %v1503_v40 = vmul.f32 %v1486_v37, %v2667_v38  ;;  %v1535_v41 = vmul.f32 %v1486_v37, %v2670_v39  ;;  %v1547_v44 = vmul.f32 %v1486_v37, %v2681_v51  ;;  %v1559_v49 = vmul.f32 %v1486_v37, %v2698_v42 }
 0x32e   :  { %v1491_v50 = vpop.permute.xlu0 %1490 }
 0x32f   :  { %v1527_v63 = vadd.f32 %v1510_v36, %v1503_v40  ;;  %v1539_v35 = vadd.f32 %v1535_v41, %v1510_v36  ;;  %v1551_v27 = vadd.f32 %v1547_v44, %v1510_v36  ;;  %v1563_v54 = vadd.f32 %v1559_v49, %v1510_v36 }
 0x330   :  { %v1504_v1 = vmul.f32 %v1491_v50, %v2675_v45  ;;  %v1536_v28 = vmul.f32 %v1491_v50, %v2678_v46  ;;  %v1548_v22 = vmul.f32 %v1491_v50, %v2692_v9  ;;  %v1560_v56 = vmul.f32 %v1491_v50, %v2704_v14 }
 0x331   :  { %v1531_v38 = vmax.f32 %v1527_v63, 0.0  ;;  %v1543_v57 = vmax.f32 %v1539_v35, 0.0  ;;  %v1555_v39 = vmax.f32 %v1551_v27, 0.0  ;;  %v1567_v59 = vmax.f32 %v1563_v54, 0.0 }
 0x332   :  { %v1528_v51 = vadd.f32 %v1515_v34, %v1504_v1  ;;  %v1540_v60 = vadd.f32 %v1536_v28, %v1515_v34  ;;  %v1552_v42 = vadd.f32 %v1548_v22, %v1515_v34  ;;  %v1564_v61 = vadd.f32 %v1560_v56, %v1515_v34  ;;  %v1520_v10 = vpop.permute.xlu0 %1519 }
 0x333   :  { %v1571_v62 = vmax.f32 %v1531_v38, %v1543_v57  ;;  %v1575_v58 = vmax.f32 %v1555_v39, %v1567_v59 }
 0x334   :  { %v1532_v32 = vmax.f32 %v1528_v51, 0.0  ;;  %v1544_v48 = vmax.f32 %v1540_v60, 0.0  ;;  %v1556_v52 = vmax.f32 %v1552_v42, 0.0  ;;  %v1568_v45 = vmax.f32 %v1564_v61, 0.0 }
 0x335   :  { %v1579_v3 = vmax.f32 %v1571_v62, %v1575_v58 }
 0x336   :  { %v1572_v46 = vmax.f32 %v1532_v32, %v1544_v48  ;;  %v1576_v43 = vmax.f32 %v1556_v52, %v1568_v45 }
 0x337   :  { %v1878_v9 = vpack.c.bf16 %v1579_v3, %v1579_v3 }
 0x338   :  { %v1580_v14 = vmax.f32 %v1572_v46, %v1576_v43 }
 0x339   :  { %1600 = vst.msk [vmem:[%s2823_s5] sm:$0xf] %vm1599_vm2, %v1878_v9 }
 0x33a   :  { %v1879_v4 = vpack.c.bf16 %v1580_v14, %v1580_v14 }
 0x33c   :  { %v1496_v15 = vpop.permute.xlu1 %1495  ;;  %1601 = vst.msk [vmem:[%s2823_s5 + $0x4] sm:$0xf] %vm1599_vm2, %v1879_v4 }
 0x33d   :  { %v1505_v7 = vmul.f32 %v1496_v15, %v2710_v2  ;;  %v1537_v19 = vmul.f32 %v1496_v15, %v2722_v6  ;;  %v1549_v11 = vmul.f32 %v1496_v15, %v2734_v12  ;;  %v1561_v53 = vmul.f32 %v1496_v15, %v2746_v17 }
 0x33f   :  { %v1529_v55 = vadd.f32 %v1520_v10, %v1505_v7  ;;  %v1541_v16 = vadd.f32 %v1537_v19, %v1520_v10  ;;  %v1553_v24 = vadd.f32 %v1549_v11, %v1520_v10  ;;  %v1565_v18 = vadd.f32 %v1561_v53, %v1520_v10 }
 0x340   :  { %v1501_v29 = vpop.permute.xlu1 %1500 }
 0x341   :  { %v1533_v21 = vmax.f32 %v1529_v55, 0.0  ;;  %v1545_v23 = vmax.f32 %v1541_v16, 0.0  ;;  %v1557_v0 = vmax.f32 %v1553_v24, 0.0  ;;  %v1569_v25 = vmax.f32 %v1565_v18, 0.0 }
 0x342   :  { %v1506_v26 = vmul.f32 %v1501_v29, %v2716_v5  ;;  %v1538_v6 = vmul.f32 %v1501_v29, %v2728_v8  ;;  %v1550_v12 = vmul.f32 %v1501_v29, %v2740_v13  ;;  %v1562_v17 = vmul.f32 %v1501_v29, %v2752_v20 }
 0x343   :  { %v1573_v47 = vmax.f32 %v1533_v21, %v1545_v23  ;;  %v1577_v2 = vmax.f32 %v1557_v0, %v1569_v25 }
 0x344   :  { %v1525_v30 = vpop.permute.xlu1 %1524 }
 0x345   :  { %v1581_v31 = vmax.f32 %v1573_v47, %v1577_v2  ;;  %v1530_v33 = vadd.f32 %v1525_v30, %v1506_v26  ;;  %v1542_v34 = vadd.f32 %v1538_v6, %v1525_v30  ;;  %v1554_v36 = vadd.f32 %v1550_v12, %v1525_v30 }
 0x346   :  { %v1566_v37 = vadd.f32 %v1562_v17, %v1525_v30 }
 0x347   :  { %v1880_v40 = vpack.c.bf16 %v1581_v31, %v1581_v31  ;;  %v1534_v41 = vmax.f32 %v1530_v33, 0.0  ;;  %v1546_v44 = vmax.f32 %v1542_v34, 0.0  ;;  %v1558_v49 = vmax.f32 %v1554_v36, 0.0 }
 0x348   :  { %v1570_v50 = vmax.f32 %v1566_v37, 0.0 }
 0x349   :  { %v1574_v5 = vmax.f32 %v1534_v41, %v1546_v44  ;;  %1602 = vst.msk [vmem:[%s2823_s5 + $0x8] sm:$0xf] %vm1599_vm2, %v1880_v40 }
 0x34a   :  { %v1578_v8 = vmax.f32 %v1558_v49, %v1570_v50 }
 0x34c   :  { %v1582_v13 = vmax.f32 %v1574_v5, %v1578_v8 }
 0x34e   :  { %v1881_v20 = vpack.c.bf16 %v1582_v13, %v1582_v13 }
 0x350   :  { %1603 = vst.msk [vmem:[%s2823_s5 + $0xc] sm:$0xf] %vm1599_vm2, %v1881_v20 }

// kernel: convnet_forward.5
= control target key start
LH: loop header
LB: loop body
LE: loop exit
PB: predicated region body
PF: predicated region fallthrough
CT: control target
= control target key end

     0   :  { %v227_v29 = vlaneseq  ;;  %v1582_v35 = vmov 1966171168   ;;  %s1939_s0 = inlined_call_operand.vmem [shape: bf16[2,1568], index: 0, kind: input, shape index: {}]   ;;  %s1940_s1 = inlined_call_operand.vmem [shape: bf16[1568,10], index: 1, kind: input, shape index: {}]   ;;  %s1941_s2 = inlined_call_operand.vmem [shape: f32[1,10], index: 2, kind: input, shape index: {}]   ;;  %s1942_s3 = inlined_call_operand.hbm [shape: f32[2,10], index: 3, kind: output, shape index: {}]  }
   0x1   :  { %v1458_v0 = vld [vmem:[%s1940_s1 + $0x40] sm:$0xff]   ;;  %v1462_v4 = vld [vmem:[%s1940_s1 + $0x48] sm:$0xff]   ;;  %v1466_v8 = vld [vmem:[%s1940_s1 + $0x50] sm:$0xff]   ;;  %v225_v36 = vunpack.c.l.s4 %v1582_v35 }
   0x2   :  { %v1459_v1 = vld [vmem:[%s1940_s1] sm:$0xff]   ;;  %1311 = vmatprep.subr.bf16.mxu0 %v1458_v0  ;;  %v1463_v5 = vld [vmem:[%s1940_s1 + $0x8] sm:$0xff]   ;;  %v1467_v9 = vld [vmem:[%s1940_s1 + $0x10] sm:$0xff]   ;;  %v228_v33 = vshrl.u32 %v227_v29, 7 }
   0x3   :  { %v1460_v2 = vld [vmem:[%s1940_s1 + $0xc0] sm:$0xff]   ;;  %1312 = vmatpush3.bf16.msra.mxu0 %v1459_v1  ;;  %v1464_v6 = vld [vmem:[%s1940_s1 + $0xc8] sm:$0xff]   ;;  %v1468_v10 = vld [vmem:[%s1940_s1 + $0xd0] sm:$0xff]   ;;  %v226_v39 = vunpack.c.0.s8 %v225_v36 }
   0x4   :  { %v1461_v3 = vld [vmem:[%s1940_s1 + $0x80] sm:$0xff]   ;;  %1333 = vmatprep.subr.bf16.mxu1 %v1460_v2  ;;  %1313 = vmatprep.subr.bf16.mxu0 %v1462_v4  ;;  %v1465_v7 = vld [vmem:[%s1940_s1 + $0x88] sm:$0xff]   ;;  %v1469_v11 = vld [vmem:[%s1940_s1 + $0x90] sm:$0xff]  }
   0x5   :  { %1334 = vmatpush3.bf16.msra.mxu1 %v1461_v3  ;;  %v1470_v12 = vld [vmem:[%s1940_s1 + $0x58] sm:$0xff]   ;;  %v1474_v16 = vld [vmem:[%s1940_s1 + $0x60] sm:$0xff]   ;;  %v1478_v20 = vld [vmem:[%s1940_s1 + $0x68] sm:$0xff]   ;;  %v1711_v41 = vsub.s32 %v226_v39, %v228_v33 }
   0x6   :  { %1335 = vmatprep.subr.bf16.mxu1 %v1464_v6  ;;  %v1471_v13 = vld [vmem:[%s1940_s1 + $0x18] sm:$0xff]   ;;  %v1475_v17 = vld [vmem:[%s1940_s1 + $0x20] sm:$0xff]   ;;  %v1479_v21 = vld [vmem:[%s1940_s1 + $0x28] sm:$0xff]  }
   0x7   :  { %1314 = vmatpush3.bf16.msra.mxu0 %v1463_v5  ;;  %v1472_v14 = vld [vmem:[%s1940_s1 + $0xd8] sm:$0xff]   ;;  %v1476_v18 = vld [vmem:[%s1940_s1 + $0xe0] sm:$0xff]   ;;  %v1480_v22 = vld [vmem:[%s1940_s1 + $0xe8] sm:$0xff]  }
   0x8   :  { %1315 = vmatprep.subr.bf16.mxu0 %v1466_v8  ;;  %v1473_v15 = vld [vmem:[%s1940_s1 + $0x98] sm:$0xff]   ;;  %v1477_v19 = vld [vmem:[%s1940_s1 + $0xa0] sm:$0xff]   ;;  %v1481_v23 = vld [vmem:[%s1940_s1 + $0xa8] sm:$0xff]  }
   0x9   :  { %1336 = vmatpush3.bf16.msra.mxu1 %v1465_v7  ;;  %v1482_v24 = vld [vmem:[%s1940_s1 + $0x70] sm:$0xff]   ;;  %v1486_v28 = vld [vmem:[%s1940_s1 + $0x78] sm:$0xff]   ;;  %v1491_v34 = vld [vmem:[%s1940_s1 + $0x140] sm:$0xff]  }
   0xa   :  { %1337 = vmatprep.subr.bf16.mxu1 %v1468_v10  ;;  %v1483_v25 = vld [vmem:[%s1940_s1 + $0x30] sm:$0xff]   ;;  %v1487_v30 = vld [vmem:[%s1940_s1 + $0x38] sm:$0xff]   ;;  %v16_v37 = vld [vmem:[%s1939_s0] sm:$0xff] }
   0xb   :  { %1316 = vmatpush3.bf16.msra.mxu0 %v1467_v9  ;;  %v1484_v26 = vld [vmem:[%s1940_s1 + $0xf0] sm:$0xff]   ;;  %v1488_v31 = vld [vmem:[%s1940_s1 + $0xf8] sm:$0xff]   ;;  %v223_v38 = vcombine.high %v16_v37, %v16_v37  ;;  %v1493_v40 = vld [vmem:[%s1940_s1 + $0x1c0] sm:$0xff]   ;;  %v230_v42 = vrot.slane %v16_v37, %v1711_v41 }
   0xc   :  { %1317 = vmatprep.subr.bf16.mxu0 %v1470_v12  ;;  %v1485_v27 = vld [vmem:[%s1940_s1 + $0xb0] sm:$0xff]   ;;  %v1489_v32 = vld [vmem:[%s1940_s1 + $0xb8] sm:$0xff]   ;;  %v1492_v48 = vld [vmem:[%s1940_s1 + $0x100] sm:$0xff]  }
   0xd   :  { %1338 = vmatpush3.bf16.msra.mxu1 %v1469_v11  ;;  %v1715_v43 = vrot.slane %v223_v38, %v1711_v41  ;;  %v238_v44 = vcombine.high %v230_v42, %v230_v42  ;;  %v246_v45 = vrot.slane %v230_v42, %v1711_v41  ;;  %v1495_v51 = vld [vmem:[%s1940_s1 + $0x148] sm:$0xff]   ;;  %v1494_v53 = vld [vmem:[%s1940_s1 + $0x180] sm:$0xff]   ;;  %v1499_v57 = vld [vmem:[%s1940_s1 + $0x150] sm:$0xff]  }
   0xe   :  { %1339 = vmatprep.subr.bf16.mxu1 %v1472_v14  ;;  %v1497_v54 = vld [vmem:[%s1940_s1 + $0x1c8] sm:$0xff]   ;;  %v1501_v59 = vld [vmem:[%s1940_s1 + $0x1d0] sm:$0xff]   ;;  %v1503_v61 = vld [vmem:[%s1940_s1 + $0x158] sm:$0xff]  }
   0xf   :  { %1318 = vmatpush3.bf16.msra.mxu0 %v1471_v13  ;;  %v239_v46 = vcombine.high %v1715_v43, %v1715_v43  ;;  %v260_v47 = vrot.slane %v238_v44, %v1711_v41  ;;  %v268_v50 = vcombine.high %v246_v45, %v246_v45  ;;  %v1496_v56 = vld [vmem:[%s1940_s1 + $0x108] sm:$0xff]   ;;  %v1500_v60 = vld [vmem:[%s1940_s1 + $0x110] sm:$0xff]   ;;  %v1505_v63 = vld [vmem:[%s1940_s1 + $0x1d8] sm:$0xff]  }
  0x10   :  { %1319 = vmatprep.subr.bf16.mxu0 %v1474_v16  ;;  %v1498_v58 = vld [vmem:[%s1940_s1 + $0x188] sm:$0xff]   ;;  %v1502_v62 = vld [vmem:[%s1940_s1 + $0x190] sm:$0xff]   ;;  %v1504_v0 = vld [vmem:[%s1940_s1 + $0x118] sm:$0xff]  }
  0x11   :  { %1340 = vmatpush3.bf16.msra.mxu1 %v1473_v15  ;;  %v267_v49 = vrot.slane %v239_v46, %v1711_v41  ;;  %947 = vmatprep.mubr.bf16.mxu0 %v260_v47  ;;  %v270_v52 = vcombine.high %v260_v47, %v260_v47  ;;  %v1507_v1 = vld [vmem:[%s1940_s1 + $0x160] sm:$0xff]   ;;  %v1506_v2 = vld [vmem:[%s1940_s1 + $0x198] sm:$0xff]   ;;  %v1511_v5 = vld [vmem:[%s1940_s1 + $0x168] sm:$0xff]  }
  0x12   :  { %1341 = vmatprep.subr.bf16.mxu1 %v1476_v18  ;;  %v1509_v3 = vld [vmem:[%s1940_s1 + $0x1e0] sm:$0xff]   ;;  %v1513_v7 = vld [vmem:[%s1940_s1 + $0x1e8] sm:$0xff]   ;;  %v1515_v9 = vld [vmem:[%s1940_s1 + $0x170] sm:$0xff]  }
  0x13   :  { %1320 = vmatpush3.bf16.msra.mxu0 %v1475_v17  ;;  %v271_v55 = vcombine.high %v267_v49, %v267_v49  ;;  %987 = vmatprep.mubr.bf16.mxu1 %v270_v52  ;;  %v1508_v4 = vld [vmem:[%s1940_s1 + $0x120] sm:$0xff]   ;;  %v1512_v8 = vld [vmem:[%s1940_s1 + $0x128] sm:$0xff]   ;;  %v1517_v11 = vld [vmem:[%s1940_s1 + $0x1f0] sm:$0xff]   ;;  %v253_v17 = vrot.slane %v1715_v43, %v1711_v41 }
  0x14   :  { %1321 = vmatprep.subr.bf16.mxu0 %v1478_v20  ;;  %v1510_v6 = vld [vmem:[%s1940_s1 + $0x1a0] sm:$0xff]   ;;  %v1514_v10 = vld [vmem:[%s1940_s1 + $0x1a8] sm:$0xff]   ;;  %v1516_v12 = vld [vmem:[%s1940_s1 + $0x130] sm:$0xff]  }
  0x15   :  { %1342 = vmatpush3.bf16.msra.mxu1 %v1477_v19  ;;  %v1519_v13 = vld [vmem:[%s1940_s1 + $0x178] sm:$0xff]   ;;  %v1518_v14 = vld [vmem:[%s1940_s1 + $0x1b0] sm:$0xff]   ;;  %v1523_v18 = vld [vmem:[%s1940_s1 + $0x240] sm:$0xff]  }
  0x16   :  { %1343 = vmatprep.subr.bf16.mxu1 %v1480_v22  ;;  %v1521_v15 = vld [vmem:[%s1940_s1 + $0x1f8] sm:$0xff]   ;;  %v1525_v20 = vld [vmem:[%s1940_s1 + $0x2c0] sm:$0xff]   ;;  %v269_v22 = vcombine.high %v253_v17, %v253_v17  ;;  %v1533_v29 = vld [vmem:[%s1940_s1 + $0x2d0] sm:$0xff]  }
  0x17   :  { %1322 = vmatpush3.bf16.msra.mxu0 %v1479_v21  ;;  %v1520_v16 = vld [vmem:[%s1940_s1 + $0x138] sm:$0xff]   ;;  %v1524_v21 = vld [vmem:[%s1940_s1 + $0x200] sm:$0xff]   ;;  %v1543_v39 = vld [vmem:[%s1940_s1 + $0x268] sm:$0xff]  }
  0x18   :  { %1323 = vmatprep.subr.bf16.mxu0 %v1482_v24  ;;  %v1522_v19 = vld [vmem:[%s1940_s1 + $0x1b8] sm:$0xff]   ;;  %v1526_v24 = vld [vmem:[%s1940_s1 + $0x280] sm:$0xff]   ;;  %v1545_v42 = vld [vmem:[%s1940_s1 + $0x2e8] sm:$0xff]  }
  0x19   :  { %1344 = vmatpush3.bf16.msra.mxu1 %v1481_v23  ;;  %v1527_v23 = vld [vmem:[%s1940_s1 + $0x248] sm:$0xff]   ;;  %v1537_v33 = vld [vmem:[%s1940_s1 + $0x2d8] sm:$0xff]   ;;  %v1539_v35 = vld [vmem:[%s1940_s1 + $0x260] sm:$0xff]  }
  0x1a   :  { %1345 = vmatprep.subr.bf16.mxu1 %v1484_v26  ;;  %v1528_v26 = vld [vmem:[%s1940_s1 + $0x208] sm:$0xff]   ;;  %v1538_v36 = vld [vmem:[%s1940_s1 + $0x298] sm:$0xff]   ;;  %v1541_v37 = vld [vmem:[%s1940_s1 + $0x2e0] sm:$0xff]  }
  0x1b   :  { %1324 = vmatpush3.bf16.msra.mxu0 %v1483_v25  ;;  %v1529_v25 = vld [vmem:[%s1940_s1 + $0x2c8] sm:$0xff]   ;;  %v1540_v38 = vld [vmem:[%s1940_s1 + $0x220] sm:$0xff]   ;;  %v1547_v44 = vld [vmem:[%s1940_s1 + $0x270] sm:$0xff]  }
  0x1c   :  { %1325 = vmatprep.subr.bf16.mxu0 %v1486_v28  ;;  %v1530_v28 = vld [vmem:[%s1940_s1 + $0x288] sm:$0xff]  }
  0x1d   :  { %1346 = vmatpush3.bf16.msra.mxu1 %v1485_v27  ;;  %v1531_v27 = vld [vmem:[%s1940_s1 + $0x250] sm:$0xff]   ;;  %v1544_v43 = vld [vmem:[%s1940_s1 + $0x228] sm:$0xff]  }
  0x1e   :  { %1347 = vmatprep.subr.bf16.mxu1 %v1488_v31  ;;  %v1535_v31 = vld [vmem:[%s1940_s1 + $0x258] sm:$0xff]   ;;  %v1546_v46 = vld [vmem:[%s1940_s1 + $0x2a8] sm:$0xff]  }
  0x1f   :  { %1326 = vmatpush3.bf16.msra.mxu0 %v1487_v30  ;;  %v1532_v30 = vld [vmem:[%s1940_s1 + $0x210] sm:$0xff]  }
  0x20   :  { %1355 = vmatprep.subr.bf16.mxu0 %v1491_v34  ;;  %v1536_v34 = vld [vmem:[%s1940_s1 + $0x218] sm:$0xff]  }
  0x21   :  { %1348 = vmatpush3.bf16.msra.mxu1 %v1489_v32  ;;  %v1534_v32 = vld [vmem:[%s1940_s1 + $0x290] sm:$0xff]  }
  0x22   :  { %1377 = vmatprep.subr.bf16.mxu1 %v1493_v40  ;;  %948 = vmatmul.mubr.bf16.vlgmr.msra.gmra.mrb[0].mxu0 %v246_v45  ;;  %v1542_v40 = vld [vmem:[%s1940_s1 + $0x2a0] sm:$0xff]   ;;  %v17_v45 = vld [vmem:[%s1939_s0 + $0x8] sm:$0x1f] }
  0x23   :  { %1356 = vmatpush3.bf16.msra.mxu0 %v1492_v48  ;;  %1027 = vmatprep.mubr.bf16.mxu0 %v267_v49  ;;  %v279_v47 = vrot.slane %v17_v45, %v1711_v41  ;;  %v1549_v48 = vld [vmem:[%s1940_s1 + $0x2f0] sm:$0xff]  }
  0x24   :  { %988 = vmatmul.mubr.bf16.vlgmr.msra.gmra.mrb[0].mxu1 %v268_v50  ;;  %1357 = vmatprep.subr.bf16.mxu0 %v1495_v51 }
  0x25   :  { %1378 = vmatpush3.bf16.msra.mxu1 %v1494_v53  ;;  %1067 = vmatprep.mubr.bf16.mxu1 %v271_v55 }
  0x26   :  { %1379 = vmatprep.subr.bf16.mxu1 %v1497_v54 }
  0x27   :  { %1358 = vmatpush3.bf16.msra.mxu0 %v1496_v56 }
  0x28   :  { %1359 = vmatprep.subr.bf16.mxu0 %v1499_v57 }
  0x29   :  { %1380 = vmatpush3.bf16.msra.mxu1 %v1498_v58 }
  0x2a   :  { %1381 = vmatprep.subr.bf16.mxu1 %v1501_v59 }
  0x2b   :  { %1360 = vmatpush3.bf16.msra.mxu0 %v1500_v60 }
  0x2c   :  { %1361 = vmatprep.subr.bf16.mxu0 %v1503_v61 }
  0x2d   :  { %1382 = vmatpush3.bf16.msra.mxu1 %v1502_v62 }
  0x2e   :  { %1383 = vmatprep.subr.bf16.mxu1 %v1505_v63 }
  0x2f   :  { %1362 = vmatpush3.bf16.msra.mxu0 %v1504_v0 }
  0x30   :  { %1363 = vmatprep.subr.bf16.mxu0 %v1507_v1 }
  0x31   :  { %1384 = vmatpush3.bf16.msra.mxu1 %v1506_v2 }
  0x32   :  { %1385 = vmatprep.subr.bf16.mxu1 %v1509_v3 }
  0x33   :  { %1364 = vmatpush3.bf16.msra.mxu0 %v1508_v4 }
  0x34   :  { %1365 = vmatprep.subr.bf16.mxu0 %v1511_v5 }
  0x35   :  { %1386 = vmatpush3.bf16.msra.mxu1 %v1510_v6 }
  0x36   :  { %1387 = vmatprep.subr.bf16.mxu1 %v1513_v7 }
  0x37   :  { %1366 = vmatpush3.bf16.msra.mxu0 %v1512_v8 }
  0x38   :  { %1367 = vmatprep.subr.bf16.mxu0 %v1515_v9 }
  0x39   :  { %1388 = vmatpush3.bf16.msra.mxu1 %v1514_v10 }
  0x3a   :  { %1389 = vmatprep.subr.bf16.mxu1 %v1517_v11 }
  0x3b   :  { %1368 = vmatpush3.bf16.msra.mxu0 %v1516_v12 }
  0x3c   :  { %1369 = vmatprep.subr.bf16.mxu0 %v1519_v13 }
  0x3d   :  { %1390 = vmatpush3.bf16.msra.mxu1 %v1518_v14 }
  0x3e   :  { %1391 = vmatprep.subr.bf16.mxu1 %v1521_v15 }
  0x3f   :  { %1370 = vmatpush3.bf16.msra.mxu0 %v1520_v16 }
  0x40   :  { %1399 = vmatprep.subr.bf16.mxu0 %v1523_v18 }
  0x41   :  { %1392 = vmatpush3.bf16.msra.mxu1 %v1522_v19 }
  0x42   :  { %1028 = vmatmul.mubr.bf16.vlgmr.msra.gmra.mrb[4].mxu0 %v253_v17  ;;  %1421 = vmatprep.subr.bf16.mxu1 %v1525_v20 }
  0x43   :  { %1400 = vmatpush3.bf16.msra.mxu0 %v1524_v21 }
  0x44   :  { %1068 = vmatmul.mubr.bf16.vlgmr.msra.gmra.mrb[4].mxu1 %v269_v22  ;;  %1401 = vmatprep.subr.bf16.mxu0 %v1527_v23 }
  0x45   :  { %1422 = vmatpush3.bf16.msra.mxu1 %v1526_v24 }
  0x46   :  { %1423 = vmatprep.subr.bf16.mxu1 %v1529_v25 }
  0x47   :  { %1402 = vmatpush3.bf16.msra.mxu0 %v1528_v26 }
  0x48   :  { %1403 = vmatprep.subr.bf16.mxu0 %v1531_v27 }
  0x49   :  { %1424 = vmatpush3.bf16.msra.mxu1 %v1530_v28 }
  0x4a   :  { %1425 = vmatprep.subr.bf16.mxu1 %v1533_v29 }
  0x4b   :  { %1404 = vmatpush3.bf16.msra.mxu0 %v1532_v30 }
  0x4c   :  { %1405 = vmatprep.subr.bf16.mxu0 %v1535_v31 }
  0x4d   :  { %1426 = vmatpush3.bf16.msra.mxu1 %v1534_v32 }
  0x4e   :  { %1427 = vmatprep.subr.bf16.mxu1 %v1537_v33 }
  0x4f   :  { %1406 = vmatpush3.bf16.msra.mxu0 %v1536_v34 }
  0x50   :  { %1407 = vmatprep.subr.bf16.mxu0 %v1539_v35 }
  0x51   :  { %1428 = vmatpush3.bf16.msra.mxu1 %v1538_v36 }
  0x52   :  { %1429 = vmatprep.subr.bf16.mxu1 %v1541_v37 }
  0x53   :  { %1408 = vmatpush3.bf16.msra.mxu0 %v1540_v38 }
  0x54   :  { %1409 = vmatprep.subr.bf16.mxu0 %v1543_v39 }
  0x55   :  { %1430 = vmatpush3.bf16.msra.mxu1 %v1542_v40 }
  0x56   :  { %1431 = vmatprep.subr.bf16.mxu1 %v1545_v42 }
  0x57   :  { %8 = vsyncpa [#allocation3], 0  ;;  %1410 = vmatpush3.bf16.msra.mxu0 %v1544_v43  ;;  %v1548_v49 = vld [vmem:[%s1940_s1 + $0x230] sm:$0xff]   ;;  %v287_v50 = vcombine.high %v279_v47, %v279_v47  ;;  %v1551_v51 = vld [vmem:[%s1940_s1 + $0x278] sm:$0xff]   ;;  %v294_v57 = vrot.slane %v279_v47, %v1711_v41  ;;  %v272_v59 = vcombine.high %v17_v45, %v17_v45  ;;  %v1583_v61 = vmov 0.0  }
  0x58   :  { %1411 = vmatprep.subr.bf16.mxu0 %v1547_v44  ;;  %v1550_v52 = vld [vmem:[%s1940_s1 + $0x2b0] sm:$0xff]   ;;  %v1553_v54 = vld [vmem:[%s1940_s1 + $0x2f8] sm:$0xff]   ;;  %v1556_v60 = vld [vmem:[%s1940_s1 + $0x300] sm:$0xff]   ;;  %vm1584_vm0 = vmmov 0   ;;  %vm911_vm1 = vcmask 261120   ;;  %vm1195_vm2 = vcmask 74752  }
  0x59   :  { %1432 = vmatpush3.bf16.msra.mxu1 %v1546_v46  ;;  %v308_v53 = vrot.slane %v287_v50, %v1711_v41  ;;  %v1552_v55 = vld [vmem:[%s1940_s1 + $0x238] sm:$0xff]   ;;  %v309_v62 = vcombine.high %v294_v57, %v294_v57  ;;  %v286_v63 = vrot.slane %v272_v59, %v1711_v41  ;;  %v1557_v0 = vld [vmem:[%s1940_s1 + $0x308] sm:$0xff]   ;;  %v1211_v3 = vld [vmem:[%s1941_s2] ss:$0 sm:$0xff] }
  0x5a   :  { %1433 = vmatprep.subr.bf16.mxu1 %v1549_v48  ;;  %v1554_v58 = vld [vmem:[%s1940_s1 + $0x2b8] sm:$0xff]   ;;  %s1585_s1 = smov [#allocation2]  }
  0x5b   :  { %1412 = vmatpush3.bf16.msra.mxu0 %v1548_v49  ;;  %1107 = vmatprep.mubr.bf16.mxu0 %v308_v53  ;;  %v310_v56 = vcombine.high %v308_v53, %v308_v53  ;;  %v301_v1 = vrot.slane %v286_v63, %v1711_v41  ;;  %s1203_s2 = sshll.u32 %s1585_s1, 4  ;;  %s1204_s2 = int_to_ptr.vmem [resolvable:$true] %s1203_s2 }
  0x5c   :  { %1413 = vmatprep.subr.bf16.mxu0 %v1551_v51  ;;  %s1558_s24 = scalar_lea.vmem %s1204_s2, 32  ;;  %p1563_p1 = scmp.lt.s32.totalorder %s1204_s2, %s1204_s2 }
  0x5d   :  { %1434 = vmatpush3.bf16.msra.mxu1 %v1550_v52  ;;  %1147 = vmatprep.mubr.bf16.mxu1 %v310_v56  ;;  %p1559_p0 = scmp.ne.s32.totalorder %s1204_s2, %s1558_s24  ;;  %p1564_p2 = scmp.lt.s32.totalorder %s1558_s24, %s1558_s24 }
  0x5e   :  { %1435 = vmatprep.subr.bf16.mxu1 %v1553_v54 }
  0x5f   :  { %1414 = vmatpush3.bf16.msra.mxu0 %v1552_v55  ;;  %p1565_p3 = por %p1564_p2, %p1563_p1 }
  0x60   :  { %1446 = vmatprep.subr.bf16.mxu0 %v1583_v61 }
  0x61   :  { %1436 = vmatpush3.bf16.msra.mxu1 %v1554_v58  ;;  %p1566_p4 = pnand %p1565_p3, %p1559_p0 }
  0x62   :  { %1108 = vmatmul.mubr.bf16.vlgmr.msra.gmra.mrb[8].mxu0 %v294_v57 }
  0x63   :  { %1447 = vmatpush3.bf16.msra.mxu0 %v1556_v60  ;;  %1450 = vmatprep.mubr.msk.bf16.mxu0 %vm1584_vm0, %v1583_v61 }
  0x64   :  { %1148 = vmatmul.mubr.bf16.vlgmr.msra.gmra.mrb[8].mxu1 %v309_v62  ;;  %1448 = vmatprep.subr.bf16.mxu0 %v1583_v61 }
  0x67   :  { %1449 = vmatpush3.bf16.msra.mxu0 %v1557_v0 }
  0x6a   :  { %1451 = vmatmul.mubr.msk.bf16.vlgmr.msra.gmra.mrb[12].mxu0 %vm911_vm1, %v301_v1 }
  0xf5   :  { %v1327_v2 = vpop.f32.mrb[0].mxu0 }
  0xf6   :  { %v1328_v4 = vpop.f32.mrb[1].mxu0 }
  0xf7   :  { %v1329_v5 = vadd.f32 %v1328_v4, %v1327_v2  ;;  %v1330_v6 = vpop.f32.mrb[2].mxu0  ;;  %v1349_v7 = vpop.f32.mrb[0].mxu1 }
  0xf8   :  { %v1331_v8 = vpop.f32.mrb[3].mxu0  ;;  %v1350_v9 = vpop.f32.mrb[1].mxu1 }
  0xf9   :  { %v950_v10 = vadd.f32 %v1329_v5, %v1211_v3  ;;  %v1351_v11 = vadd.f32 %v1350_v9, %v1349_v7  ;;  %v1352_v12 = vpop.f32.mrb[2].mxu1 }
  0xfa   :  { %v1353_v13 = vpop.f32.mrb[3].mxu1 }
  0xfb   :  { %v990_v14 = vadd.f32 %v1351_v11, %v950_v10 }
 0x115   :  { %v1371_v41 = vpop.f32.mrb[4].mxu0 }
 0x116   :  { %v1372_v15 = vpop.f32.mrb[5].mxu0 }
 0x117   :  { %v1373_v16 = vadd.f32 %v1372_v15, %v1371_v41  ;;  %v1374_v17 = vpop.f32.mrb[6].mxu0  ;;  %v1393_v18 = vpop.f32.mrb[4].mxu1 }
 0x118   :  { %v1375_v19 = vpop.f32.mrb[7].mxu0  ;;  %v1394_v20 = vpop.f32.mrb[5].mxu1 }
 0x119   :  { %v1030_v21 = vadd.f32 %v1373_v16, %v990_v14  ;;  %v1395_v22 = vadd.f32 %v1394_v20, %v1393_v18  ;;  %v1396_v23 = vpop.f32.mrb[6].mxu1 }
 0x11a   :  { %v1397_v24 = vpop.f32.mrb[7].mxu1 }
 0x11b   :  { %v1070_v25 = vadd.f32 %v1395_v22, %v1030_v21 }
 0x135   :  { %v1415_v26 = vpop.f32.mrb[8].mxu0 }
 0x136   :  { %v1416_v27 = vpop.f32.mrb[9].mxu0 }
 0x137   :  { %v1417_v28 = vadd.f32 %v1416_v27, %v1415_v26  ;;  %v1437_v29 = vpop.f32.mrb[8].mxu1  ;;  %v1418_v30 = vpop.f32.mrb[10].mxu0 }
 0x138   :  { %v1438_v31 = vpop.f32.mrb[9].mxu1  ;;  %v1419_v32 = vpop.f32.mrb[11].mxu0 }
 0x139   :  { %v1110_v33 = vadd.f32 %v1417_v28, %v1070_v25  ;;  %v1439_v34 = vadd.f32 %v1438_v31, %v1437_v29  ;;  %v1440_v35 = vpop.f32.mrb[10].mxu1 }
 0x13a   :  { %v1441_v36 = vpop.f32.mrb[11].mxu1 }
 0x13b   :  { %v1150_v37 = vadd.f32 %v1439_v34, %v1110_v33 }
 0x13d   :  { %v1189_v38 = vpop.f32.mrb[12].mxu0 }
 0x13e   :  { %v1190_v39 = vadd.f32 %v1189_v38, %v1150_v37  ;;  %v1452_v40 = vpop.f32.mrb[13].mxu0 }
 0x13f   :  { %v1192_v42 = vpop.f32.mrb[14].mxu0 }
 0x140   :  { %v1453_v43 = vpop.f32.mrb[15].mxu0  ;;  %1196 = vst.msk [vmem:[#allocation2] sm:$0x3] %vm1195_vm2, %v1190_v39 }
 0x141   :  { %1569 = shalt.err (!%p1566_p4)
}
 0x142   :  { %s1570_s27 = scalar_lea.hbm %s1942_s3, 32 }
 0x143   :  { %p1571_p5 = scmp.ne.s32.totalorder %s1942_s3, %s1570_s27  ;;  %p1574_p6 = scmp.lt.u32.totalorder %s1570_s27, %s1942_s3 }
 0x145   :  { %p1576_p7 = pnand %p1574_p6, %p1571_p5 }
 0x147   :  { %1579 = shalt.err (!%p1576_p7)
}
 0x148   :  { %1206 = dma.vmem_to_hbm [thread:$0]  %s1204_s2, 32, %s1942_s3, [#allocation3]  }
 0x149   :  { %1580 = dma.done.wait [#allocation3], 32  }
 0x14a   :  { %1581 = vsyncadd [#allocation3], 4294967264 }
 0x14b   :  { %1210 = vsyncpa [#allocation3], 1 }

</bundles_post_ra>
